<compile_context>
chip_gen: v7x
topology: tpu7x:2x2x1
jax: 0.10.0
libtpu: 0.0.40
codegen_flags: <defaults>
</compile_context>

<pallas_src>
import functools

import jax
import jax.numpy as jnp
from jax import lax
from jax.experimental import pallas as pl
from jax.experimental.pallas import tpu as pltpu


# ---------------------------------------------------------------------------
# Helpers
# ---------------------------------------------------------------------------

def _pick_tile(dim, preferred, granule):
    """Largest tile <= preferred that divides `dim` and is a multiple of
    `granule` (TPU (8,128) layout rule); falls back to the full dim."""
    if dim <= preferred or dim % granule != 0:
        return dim
    t = (preferred // granule) * granule
    while t >= granule:
        if dim % t == 0:
            return t
        t -= granule
    return dim


def _vmem_limit_bytes():
    """Per-generation scoped-VMEM limit (64 MiB on 128 MiB parts, 32 MiB on v7x)."""
    try:
        cap = pltpu.get_tpu_info().vmem_capacity_bytes
    except Exception:
        cap = 64 * 1024 * 1024  # conservative fallback, safe on v7x's 64 MiB
    return int(min(64 * 1024 * 1024, cap // 2))


# ---------------------------------------------------------------------------
# Fused MHA kernel
# ---------------------------------------------------------------------------

def _fused_mha_kernel(x_q_ref, x_kv_ref, wq_ref, wk_ref, wv_ref, wo_ref, bo_ref,
                      *rest, num_heads, num_qk, num_v, has_rpb, has_mask):
    # Grid: (batch, q-tile, kv-tile); kv-tile is the "arbitrary" reduction axis.
    #   x_q:  (1, tq, D)           x_kv: (1, tkv, C)
    #   wq:   (D, num_qk) bf16, dp_scale pre-folded
    #   wk:   (C, num_qk) bf16     wv: (C, num_v) bf16
    #   wo:   (num_v, num_out) bf16, bo: (1, num_out) f32
    #   rpb:  (1, tkv, num_qk) f32 (optional)   mask: (1, 1, tkv) bool (optional)
    rest = list(rest)
    rpb_ref = rest.pop(0) if has_rpb else None
    mask_ref = rest.pop(0) if has_mask else None
    o_ref, q_scr, m_scr, l_scr, acc_scr = rest

    ki = pl.program_id(2)
    nk = pl.num_programs(2)
    c_qk = num_qk // num_heads
    c_v = num_v // num_heads
    # Scores stay f32, so the f32 "max negative" fill is dtype-correct and,
    # combined with the online-softmax alpha correction, reproduces the
    # reference's behaviour (including uniform attention on fully-masked rows).
    neg = -jnp.finfo(jnp.float32).max

    # ---- init + fused q projection, once per (batch, q-tile) ----
    @pl.when(ki == 0)
    def _():
        xq = x_q_ref[0].astype(jnp.bfloat16)                       # (tq, D)
        q = jnp.dot(xq, wq_ref[...], preferred_element_type=jnp.float32)
        q_scr[...] = q.astype(jnp.bfloat16)                        # (tq, num_qk)
        m_scr[...] = jnp.full(m_scr.shape, -jnp.inf, m_scr.dtype)
        l_scr[...] = jnp.zeros(l_scr.shape, l_scr.dtype)
        acc_scr[...] = jnp.zeros(acc_scr.shape, acc_scr.dtype)

    # ---- fused k/v projection for this kv tile (one x_kv read, two MXU dots) ----
    xkv = x_kv_ref[0].astype(jnp.bfloat16)                         # (tkv, C)
    k = jnp.dot(xkv, wk_ref[...], preferred_element_type=jnp.float32)   # (tkv, num_qk)
    if has_rpb:
        k = k + rpb_ref[0]                                         # rpb biases k only
    v = jnp.dot(xkv, wv_ref[...], preferred_element_type=jnp.float32)   # (tkv, num_v)
    k = k.astype(jnp.bfloat16)
    v = v.astype(jnp.bfloat16)

    if has_mask:
        mask = mask_ref[0]                                         # (1, tkv), True = pad

    # ---- per-head attention, online softmax; results written straight into
    #      acc_scr slices (no concat, head liveness bounded per iteration) ----
    for h in range(num_heads):
        qh = q_scr[:, pl.ds(h * c_qk, c_qk)]                       # (tq, c_qk) bf16
        kh = lax.slice_in_dim(k, h * c_qk, (h + 1) * c_qk, axis=1)  # (tkv, c_qk)
        vh = lax.slice_in_dim(v, h * c_v, (h + 1) * c_v, axis=1)    # (tkv, c_v)

        # q @ k^T without an explicit transpose (contract last dims), bf16->f32.
        s = lax.dot_general(qh, kh, (((1,), (1,)), ((), ())),
                            preferred_element_type=jnp.float32)     # (tq, tkv) f32
        if has_mask:
            s = jnp.where(mask, neg, s)

        m_old = m_scr[h]                                            # (tq, 1) f32
        m_new = jnp.maximum(m_old, jnp.max(s, axis=-1, keepdims=True))
        alpha = jnp.exp(m_old - m_new)
        p = jnp.exp(s - m_new)                                      # f32
        l_scr[h] = alpha * l_scr[h] + jnp.sum(p, axis=-1, keepdims=True)
        pv = lax.dot_general(p.astype(jnp.bfloat16), vh,
                             (((1,), (0,)), ((), ())),
                             preferred_element_type=jnp.float32)    # (tq, c_v)
        acc_scr[:, pl.ds(h * c_v, c_v)] = (
            alpha * acc_scr[:, pl.ds(h * c_v, c_v)] + pv)
        m_scr[h] = m_new
        # TODO(synk): attention-matrix dropout omitted (eval mode / p == 0.0).

    # ---- epilogue: normalize, merge heads in place, fused output projection ----
    @pl.when(ki == nk - 1)
    def _():
        for h in range(num_heads):
            inv_l = pl.reciprocal(l_scr[h], approx=True)            # EUP slot
            acc_scr[:, pl.ds(h * c_v, c_v)] = (
                acc_scr[:, pl.ds(h * c_v, c_v)] * inv_l)
        o = acc_scr[...].astype(jnp.bfloat16)                       # (tq, num_v)
        out = jnp.dot(o, wo_ref[...],
                      preferred_element_type=jnp.float32) + bo_ref[...]
        o_ref[0] = out.astype(o_ref.dtype)                          # lane-dense store


# ---------------------------------------------------------------------------
# Parameters + wrapper
# ---------------------------------------------------------------------------

def init_params(key, num_heads, num_q_in, num_kv_in,
                num_qk=None, num_v=None, num_out=None,
                rpb=False, feat_w=32, feat_h=32):
    if num_qk is None:
        num_qk = num_q_in
    if num_v is None:
        num_v = num_qk
    if num_out is None:
        num_out = num_q_in
    assert num_qk % num_heads == 0 and num_v % num_heads == 0

    ks = jax.random.split(key, 6)
    scale_q = 1.0 / jnp.sqrt(num_q_in)
    scale_kv = 1.0 / jnp.sqrt(num_kv_in)
    scale_o = 1.0 / jnp.sqrt(num_v)
    params = {
        # stored already transposed: (in, out), i.e. y = x @ W
        "wq": jax.random.uniform(ks[0], (num_q_in, num_qk), jnp.float32,
                                 -scale_q, scale_q),
        "wk": jax.random.uniform(ks[1], (num_kv_in, num_qk), jnp.float32,
                                 -scale_kv, scale_kv),
        "wv": jax.random.uniform(ks[2], (num_kv_in, num_v), jnp.float32,
                                 -scale_kv, scale_kv),
        "wo": jax.random.uniform(ks[3], (num_v, num_out), jnp.float32,
                                 -scale_o, scale_o),
        "bo": jax.random.uniform(ks[4], (num_out,), jnp.float32,
                                 -scale_o, scale_o),
    }
    if rpb:
        params["rpb"] = jnp.zeros((1, feat_w * feat_h, num_qk), jnp.float32)
    cfg = dict(num_heads=num_heads, num_qk=num_qk, num_v=num_v,
               num_out=num_out, rpb=rpb)
    return params, cfg


def multi_head_attention(params, cfg, x_q, x_kv, pad_mask=None,
                         *, tq_pref=256, tkv_pref=512):
    """x_q: (B, N, D), x_kv: (B, L, C), pad_mask: optional (B, L) bool (True = pad)."""
    B, N, D = x_q.shape
    _, L, C = x_kv.shape
    H = cfg["num_heads"]
    num_qk, num_v, num_out = cfg["num_qk"], cfg["num_v"], cfg["num_out"]
    dp_scale = float(num_qk // H) ** (-0.5)
    has_rpb = bool(cfg["rpb"])
    has_mask = pad_mask is not None

    # bf16 MXU operands (f32 accumulation happens in-kernel); dp_scale folded
    # into wq at trace time so the kernel never does the full-tile multiply.
    # TODO(synk): for very large channel counts the whole-weight VMEM blocks
    # should be channel-tiled instead; Perceiver-scale weights fit trivially.
    wq = (params["wq"] * dp_scale).astype(jnp.bfloat16)
    wk = params["wk"].astype(jnp.bfloat16)
    wv = params["wv"].astype(jnp.bfloat16)
    wo = params["wo"].astype(jnp.bfloat16)
    bo = params["bo"].reshape(1, num_out).astype(jnp.float32)

    tq = _pick_tile(N, tq_pref, 8)      # query tile (sublane granule)
    tkv = _pick_tile(L, tkv_pref, 128)  # kv tile (lane granule for the mask block)
    grid = (B, N // tq, L // tkv)

    in_specs = [
        pl.BlockSpec((1, tq, D), lambda b, qi, ki: (b, qi, 0)),
        pl.BlockSpec((1, tkv, C), lambda b, qi, ki: (b, ki, 0)),
        pl.BlockSpec((D, num_qk), lambda b, qi, ki: (0, 0)),
        pl.BlockSpec((C, num_qk), lambda b, qi, ki: (0, 0)),
        pl.BlockSpec((C, num_v), lambda b, qi, ki: (0, 0)),
        pl.BlockSpec((num_v, num_out), lambda b, qi, ki: (0, 0)),
        pl.BlockSpec((1, num_out), lambda b, qi, ki: (0, 0)),
    ]
    inputs = [x_q, x_kv, wq, wk, wv, wo, bo]
    if has_rpb:
        in_specs.append(pl.BlockSpec((1, tkv, num_qk), lambda b, qi, ki: (0, ki, 0)))
        inputs.append(params["rpb"].astype(jnp.float32))
    if has_mask:
        in_specs.append(pl.BlockSpec((1, 1, tkv), lambda b, qi, ki: (b, 0, ki)))
        inputs.append(pad_mask.reshape(B, 1, L).astype(jnp.bool_))

    kernel = functools.partial(
        _fused_mha_kernel, num_heads=H, num_qk=num_qk, num_v=num_v,
        has_rpb=has_rpb, has_mask=has_mask)

    return pl.pallas_call(
        kernel,
        out_shape=jax.ShapeDtypeStruct((B, N, num_out), x_q.dtype),
        grid=grid,
        in_specs=in_specs,
        out_specs=pl.BlockSpec((1, tq, num_out), lambda b, qi, ki: (b, qi, 0)),
        scratch_shapes=[
            pltpu.VMEM((tq, num_qk), jnp.bfloat16),   # projected (scaled) q
            pltpu.VMEM((H, tq, 1), jnp.float32),      # running row max per head
            pltpu.VMEM((H, tq, 1), jnp.float32),      # running denominator per head
            pltpu.VMEM((tq, num_v), jnp.float32),     # merged-head accumulator
        ],
        compiler_params=pltpu.CompilerParams(
            dimension_semantics=("parallel", "parallel", "arbitrary"),
            vmem_limit_bytes=_vmem_limit_bytes(),
        ),
    )(*inputs)


# ---------------------------------------------------------------------------
# Reference (plain JAX, f32) for a sanity check
# ---------------------------------------------------------------------------

def reference_mha(params, cfg, x_q, x_kv, pad_mask=None):
    B, N, D = x_q.shape
    _, L, C = x_kv.shape
    H = cfg["num_heads"]
    c_qk = cfg["num_qk"] // H
    c_v = cfg["num_v"] // H
    dp_scale = float(c_qk) ** (-0.5)

    q = x_q @ params["wq"]
    k = x_kv @ params["wk"]
    v = x_kv @ params["wv"]
    if cfg["rpb"]:
        k = k + params["rpb"]

    def split(x, cph):
        b, n, _ = x.shape
        return x.reshape(b, n, H, cph).transpose(0, 2, 1, 3)

    qh, kh, vh = split(q, c_qk), split(k, c_qk), split(v, c_v)
    s = jnp.einsum("bhic,bhjc->bhij", qh, kh) * dp_scale
    if pad_mask is not None:
        neg = -jnp.finfo(s.dtype).max
        s = jnp.where(pad_mask[:, None, None, :], neg, s)
    attn = jax.nn.softmax(s, axis=-1)
    oh = jnp.einsum("bhij,bhjc->bhic", attn, vh)
    o = oh.transpose(0, 2, 1, 3).reshape(B, N, cfg["num_v"])
    return o @ params["wo"] + params["bo"]


# ---------------------------------------------------------------------------
# Demo
# ---------------------------------------------------------------------------

if __name__ == "__main__":
    key = jax.random.PRNGKey(0)
    k_param, k_q, k_kv, k_mask = jax.random.split(key, 4)

    B, N, L = 2, 8, 16
    num_q_in, num_kv_in = 32, 32
    num_heads = 4

    params, cfg = init_params(k_param, num_heads, num_q_in, num_kv_in)

    x_q = jax.random.normal(k_q, (B, N, num_q_in), dtype=jnp.float32)
    x_kv = jax.random.normal(k_kv, (B, L, num_kv_in), dtype=jnp.float32)
    # pad-mask with a couple of padded kv tokens per batch element
    pad_mask = jnp.zeros((B, L), dtype=jnp.bool_).at[:, -2:].set(True)

    # masked variant
    out = multi_head_attention(params, cfg, x_q, x_kv, pad_mask=pad_mask)
    out = jax.block_until_ready(out)
    ref = reference_mha(params, cfg, x_q, x_kv, pad_mask=pad_mask)
    assert out.shape == (B, N, num_q_in)
    # bf16 MXU operands vs f32 reference -> loose-ish tolerance
    assert jnp.allclose(out, ref, atol=2e-2, rtol=2e-2), "mismatch vs reference (masked)"

    # no-mask variant (separate specialization: no mask DMA / selects)
    out2 = multi_head_attention(params, cfg, x_q, x_kv)
    out2 = jax.block_until_ready(out2)
    ref2 = reference_mha(params, cfg, x_q, x_kv)
    assert jnp.allclose(out2, ref2, atol=2e-2, rtol=2e-2), "mismatch vs reference (no mask)"

    print("KERNEL_OK")
</pallas_src>

<mosaic_0001>
module attributes {stable_mosaic.version = 11 : i64} {
  func.func @_fused_mha_kernel(%arg0: i32, %arg1: i32, %arg2: i32, %arg3: memref<1x8x32xf32, #tpu.memory_space<vmem>>, %arg4: memref<1x16x32xf32, #tpu.memory_space<vmem>>, %arg5: memref<32x32xbf16, #tpu.memory_space<vmem>>, %arg6: memref<32x32xbf16, #tpu.memory_space<vmem>>, %arg7: memref<32x32xbf16, #tpu.memory_space<vmem>>, %arg8: memref<32x32xbf16, #tpu.memory_space<vmem>>, %arg9: memref<1x32xf32, #tpu.memory_space<vmem>>, %arg10: memref<1x1x16xi32, #tpu.memory_space<vmem>>, %arg11: memref<1x8x32xf32, #tpu.memory_space<vmem>>, %arg12: memref<8x32xbf16, #tpu.memory_space<vmem>>, %arg13: memref<4x8x1xf32, #tpu.memory_space<vmem>>, %arg14: memref<4x8x1xf32, #tpu.memory_space<vmem>>, %arg15: memref<8x32xf32, #tpu.memory_space<vmem>>) attributes {dimension_semantics = [#tpu.dimension_semantics<parallel>, #tpu.dimension_semantics<parallel>, #tpu.dimension_semantics<arbitrary>], iteration_bounds = array<i64: 2, 1, 1>, scalar_prefetch = 0 : i64, scratch_operands = 4 : i64, tpu.core_type = #tpu.core_type<tc>, window_params = [{transform_indices = @transform_0, window_bounds = array<i64: 1, 8, 32>}, {transform_indices = @transform_1, window_bounds = array<i64: 1, 16, 32>}, {pipeline_mode = #tpu.pipeline_mode<synchronous>, transform_indices = @transform_2, window_bounds = array<i64: 32, 32>}, {pipeline_mode = #tpu.pipeline_mode<synchronous>, transform_indices = @transform_3, window_bounds = array<i64: 32, 32>}, {pipeline_mode = #tpu.pipeline_mode<synchronous>, transform_indices = @transform_4, window_bounds = array<i64: 32, 32>}, {pipeline_mode = #tpu.pipeline_mode<synchronous>, transform_indices = @transform_5, window_bounds = array<i64: 32, 32>}, {pipeline_mode = #tpu.pipeline_mode<synchronous>, transform_indices = @transform_6, window_bounds = array<i64: 1, 32>}, {transform_indices = @transform_7, window_bounds = array<i64: 1, 1, 16>}, {transform_indices = @transform_8, window_bounds = array<i64: 1, 8, 32>}]} {
    %c0_i32 = arith.constant 0 : i32
    %0 = arith.cmpi eq, %arg2, %c0_i32 : i32
    %1 = arith.extui %0 : i1 to i32
    %c0_i32_0 = arith.constant 0 : i32
    %2 = arith.cmpi ne, %1, %c0_i32_0 : i32
    scf.if %2 {
      %c0_100 = arith.constant 0 : index
      %c0_101 = arith.constant 0 : index
      %c0_102 = arith.constant 0 : index
      %166 = vector.load %arg3[%c0_100, %c0_101, %c0_102] : memref<1x8x32xf32, #tpu.memory_space<vmem>>, vector<1x8x32xf32>
      %167 = vector.shape_cast %166 : vector<1x8x32xf32> to vector<8x32xf32>
      %168 = arith.truncf %167 : vector<8x32xf32> to vector<8x32xbf16>
      %c0_103 = arith.constant 0 : index
      %c0_104 = arith.constant 0 : index
      %169 = vector.load %arg5[%c0_103, %c0_104] : memref<32x32xbf16, #tpu.memory_space<vmem>>, vector<32x32xbf16>
      %cst_105 = arith.constant dense<0.000000e+00> : vector<8x32xf32>
      %170 = tpu.matmul %168, %169, %cst_105 {dimension_numbers = #tpu.dot_dimension_numbers<[1], [0], [0], [1], [0, 0, 1, 1], [], []>} : vector<8x32xbf16>, vector<32x32xbf16>, vector<8x32xf32> -> vector<8x32xf32>
      %171 = arith.truncf %170 : vector<8x32xf32> to vector<8x32xbf16>
      %c0_106 = arith.constant 0 : index
      %c0_107 = arith.constant 0 : index
      %172 = vector.load %arg12[%c0_106, %c0_107] : memref<8x32xbf16, #tpu.memory_space<vmem>>, vector<8x32xbf16>
      tpu.vector_store %arg12[%c0_106, %c0_107], %171 {strides = array<i32>} : memref<8x32xbf16, #tpu.memory_space<vmem>>, vector<8x32xbf16>,
      %cst_108 = arith.constant 0xFF800000 : f32
      %173 = vector.broadcast %cst_108 : f32 to vector<4x8x1xf32>
      %c0_109 = arith.constant 0 : index
      %c0_110 = arith.constant 0 : index
      %c0_111 = arith.constant 0 : index
      %174 = vector.load %arg13[%c0_109, %c0_110, %c0_111] : memref<4x8x1xf32, #tpu.memory_space<vmem>>, vector<4x8x1xf32>
      tpu.vector_store %arg13[%c0_109, %c0_110, %c0_111], %173 {strides = array<i32>} : memref<4x8x1xf32, #tpu.memory_space<vmem>>, vector<4x8x1xf32>,
      %cst_112 = arith.constant 0.000000e+00 : f32
      %175 = vector.broadcast %cst_112 : f32 to vector<4x8x1xf32>
      %c0_113 = arith.constant 0 : index
      %c0_114 = arith.constant 0 : index
      %c0_115 = arith.constant 0 : index
      %176 = vector.load %arg14[%c0_113, %c0_114, %c0_115] : memref<4x8x1xf32, #tpu.memory_space<vmem>>, vector<4x8x1xf32>
      tpu.vector_store %arg14[%c0_113, %c0_114, %c0_115], %175 {strides = array<i32>} : memref<4x8x1xf32, #tpu.memory_space<vmem>>, vector<4x8x1xf32>,
      %cst_116 = arith.constant 0.000000e+00 : f32
      %177 = vector.broadcast %cst_116 : f32 to vector<8x32xf32>
      %c0_117 = arith.constant 0 : index
      %c0_118 = arith.constant 0 : index
      %178 = vector.load %arg15[%c0_117, %c0_118] : memref<8x32xf32, #tpu.memory_space<vmem>>, vector<8x32xf32>
      tpu.vector_store %arg15[%c0_117, %c0_118], %177 {strides = array<i32>} : memref<8x32xf32, #tpu.memory_space<vmem>>, vector<8x32xf32>,
    } else {
    }
    %c0 = arith.constant 0 : index
    %c0_1 = arith.constant 0 : index
    %c0_2 = arith.constant 0 : index
    %3 = vector.load %arg4[%c0, %c0_1, %c0_2] : memref<1x16x32xf32, #tpu.memory_space<vmem>>, vector<1x16x32xf32>
    %4 = vector.shape_cast %3 : vector<1x16x32xf32> to vector<16x32xf32>
    %5 = arith.truncf %4 : vector<16x32xf32> to vector<16x32xbf16>
    %c0_3 = arith.constant 0 : index
    %c0_4 = arith.constant 0 : index
    %6 = vector.load %arg6[%c0_3, %c0_4] : memref<32x32xbf16, #tpu.memory_space<vmem>>, vector<32x32xbf16>
    %cst = arith.constant dense<0.000000e+00> : vector<16x32xf32>
    %7 = tpu.matmul %5, %6, %cst {dimension_numbers = #tpu.dot_dimension_numbers<[1], [0], [0], [1], [0, 0, 1, 1], [], []>} : vector<16x32xbf16>, vector<32x32xbf16>, vector<16x32xf32> -> vector<16x32xf32>
    %c0_5 = arith.constant 0 : index
    %c0_6 = arith.constant 0 : index
    %8 = vector.load %arg7[%c0_5, %c0_6] : memref<32x32xbf16, #tpu.memory_space<vmem>>, vector<32x32xbf16>
    %cst_7 = arith.constant dense<0.000000e+00> : vector<16x32xf32>
    %9 = tpu.matmul %5, %8, %cst_7 {dimension_numbers = #tpu.dot_dimension_numbers<[1], [0], [0], [1], [0, 0, 1, 1], [], []>} : vector<16x32xbf16>, vector<32x32xbf16>, vector<16x32xf32> -> vector<16x32xf32>
    %10 = arith.truncf %7 : vector<16x32xf32> to vector<16x32xbf16>
    %11 = arith.truncf %9 : vector<16x32xf32> to vector<16x32xbf16>
    %c0_8 = arith.constant 0 : index
    %c0_9 = arith.constant 0 : index
    %c0_10 = arith.constant 0 : index
    %12 = vector.load %arg10[%c0_8, %c0_9, %c0_10] : memref<1x1x16xi32, #tpu.memory_space<vmem>>, vector<1x1x16xi32>
    %13 = vector.shape_cast %12 : vector<1x1x16xi32> to vector<1x16xi32>
    %cst_11 = arith.constant dense<0> : vector<1x16xi32>
    %14 = arith.cmpi ne, %13, %cst_11 : vector<1x16xi32>
    %c0_12 = arith.constant 0 : index
    %c0_13 = arith.constant 0 : index
    %15 = vector.load %arg12[%c0_12, %c0_13] : memref<8x32xbf16, #tpu.memory_space<vmem>>, vector<8x8xbf16>
    %16 = vector.extract_strided_slice %10 {offsets = [0, 0], sizes = [16, 8], strides = [1, 1]} : vector<16x32xbf16> to vector<16x8xbf16>
    %17 = vector.extract_strided_slice %11 {offsets = [0, 0], sizes = [16, 8], strides = [1, 1]} : vector<16x32xbf16> to vector<16x8xbf16>
    %cst_14 = arith.constant dense<0.000000e+00> : vector<8x16xf32>
    %18 = tpu.matmul %15, %16, %cst_14 {dimension_numbers = #tpu.dot_dimension_numbers<[1], [1], [0], [0], [0, 0, 1, 0], [], []>} : vector<8x8xbf16>, vector<16x8xbf16>, vector<8x16xf32> -> vector<8x16xf32>
    %cst_15 = arith.constant -3.40282347E+38 : f32
    %19 = vector.shape_cast %14 : vector<1x16xi1> to vector<1x16xi1>
    %20 = vector.broadcast %19 : vector<1x16xi1> to vector<8x16xi1>
    %21 = vector.broadcast %cst_15 : f32 to vector<8x16xf32>
    %22 = arith.select %20, %21, %18 : vector<8x16xi1>, vector<8x16xf32>
    %c0_16 = arith.constant 0 : index
    %c0_17 = arith.constant 0 : index
    %c0_18 = arith.constant 0 : index
    %23 = vector.load %arg13[%c0_16, %c0_17, %c0_18] : memref<4x8x1xf32, #tpu.memory_space<vmem>>, vector<1x8x1xf32>
    %24 = vector.shape_cast %23 : vector<1x8x1xf32> to vector<8x1xf32>
    %cst_19 = arith.constant dense<0xFF800000> : vector<8xf32>
    %25 = vector.multi_reduction <maximumf>, %22, %cst_19 [1] : vector<8x16xf32> to vector<8xf32>
    %26 = vector.shape_cast %25 : vector<8xf32> to vector<8x1xf32>
    %27 = arith.maximumf %24, %26 : vector<8x1xf32>
    %28 = arith.subf %24, %27 : vector<8x1xf32>
    %29 = math.exp %28 : vector<8x1xf32>
    %30 = vector.broadcast %27 : vector<8x1xf32> to vector<8x16xf32>
    %31 = arith.subf %22, %30 : vector<8x16xf32>
    %32 = math.exp %31 : vector<8x16xf32>
    %c0_20 = arith.constant 0 : index
    %c0_21 = arith.constant 0 : index
    %c0_22 = arith.constant 0 : index
    %33 = vector.load %arg14[%c0_20, %c0_21, %c0_22] : memref<4x8x1xf32, #tpu.memory_space<vmem>>, vector<1x8x1xf32>
    %34 = vector.shape_cast %33 : vector<1x8x1xf32> to vector<8x1xf32>
    %35 = arith.mulf %29, %34 : vector<8x1xf32>
    %cst_23 = arith.constant dense<0.000000e+00> : vector<8xf32>
    %36 = vector.multi_reduction <add>, %32, %cst_23 [1] : vector<8x16xf32> to vector<8xf32>
    %37 = vector.shape_cast %36 : vector<8xf32> to vector<8x1xf32>
    %38 = arith.addf %35, %37 : vector<8x1xf32>
    %c0_24 = arith.constant 0 : index
    %c0_25 = arith.constant 0 : index
    %c0_26 = arith.constant 0 : index
    %39 = vector.load %arg14[%c0_24, %c0_25, %c0_26] : memref<4x8x1xf32, #tpu.memory_space<vmem>>, vector<1x8x1xf32>
    %40 = vector.shape_cast %39 : vector<1x8x1xf32> to vector<8x1xf32>
    %41 = vector.shape_cast %38 : vector<8x1xf32> to vector<1x8x1xf32>
    tpu.vector_store %arg14[%c0_24, %c0_25, %c0_26], %41 {strides = array<i32>} : memref<4x8x1xf32, #tpu.memory_space<vmem>>, vector<1x8x1xf32>,
    %42 = arith.truncf %32 : vector<8x16xf32> to vector<8x16xbf16>
    %cst_27 = arith.constant dense<0.000000e+00> : vector<8x8xf32>
    %43 = tpu.matmul %42, %17, %cst_27 {dimension_numbers = #tpu.dot_dimension_numbers<[1], [0], [0], [1], [0, 0, 1, 1], [], []>} : vector<8x16xbf16>, vector<16x8xbf16>, vector<8x8xf32> -> vector<8x8xf32>
    %c0_28 = arith.constant 0 : index
    %c0_29 = arith.constant 0 : index
    %44 = vector.load %arg15[%c0_28, %c0_29] : memref<8x32xf32, #tpu.memory_space<vmem>>, vector<8x8xf32>
    %45 = vector.broadcast %29 : vector<8x1xf32> to vector<8x8xf32>
    %46 = arith.mulf %45, %44 : vector<8x8xf32>
    %47 = arith.addf %46, %43 : vector<8x8xf32>
    %c0_30 = arith.constant 0 : index
    %c0_31 = arith.constant 0 : index
    %48 = vector.load %arg15[%c0_30, %c0_31] : memref<8x32xf32, #tpu.memory_space<vmem>>, vector<8x8xf32>
    tpu.vector_store %arg15[%c0_30, %c0_31], %47 {strides = array<i32>} : memref<8x32xf32, #tpu.memory_space<vmem>>, vector<8x8xf32>,
    %c0_32 = arith.constant 0 : index
    %c0_33 = arith.constant 0 : index
    %c0_34 = arith.constant 0 : index
    %49 = vector.load %arg13[%c0_32, %c0_33, %c0_34] : memref<4x8x1xf32, #tpu.memory_space<vmem>>, vector<1x8x1xf32>
    %50 = vector.shape_cast %49 : vector<1x8x1xf32> to vector<8x1xf32>
    %51 = vector.shape_cast %27 : vector<8x1xf32> to vector<1x8x1xf32>
    tpu.vector_store %arg13[%c0_32, %c0_33, %c0_34], %51 {strides = array<i32>} : memref<4x8x1xf32, #tpu.memory_space<vmem>>, vector<1x8x1xf32>,
    %c0_35 = arith.constant 0 : index
    %c8 = arith.constant 8 : index
    %52 = vector.load %arg12[%c0_35, %c8] : memref<8x32xbf16, #tpu.memory_space<vmem>>, vector<8x8xbf16>
    %53 = vector.extract_strided_slice %10 {offsets = [0, 8], sizes = [16, 8], strides = [1, 1]} : vector<16x32xbf16> to vector<16x8xbf16>
    %54 = vector.extract_strided_slice %11 {offsets = [0, 8], sizes = [16, 8], strides = [1, 1]} : vector<16x32xbf16> to vector<16x8xbf16>
    %cst_36 = arith.constant dense<0.000000e+00> : vector<8x16xf32>
    %55 = tpu.matmul %52, %53, %cst_36 {dimension_numbers = #tpu.dot_dimension_numbers<[1], [1], [0], [0], [0, 0, 1, 0], [], []>} : vector<8x8xbf16>, vector<16x8xbf16>, vector<8x16xf32> -> vector<8x16xf32>
    %cst_37 = arith.constant -3.40282347E+38 : f32
    %56 = vector.shape_cast %14 : vector<1x16xi1> to vector<1x16xi1>
    %57 = vector.broadcast %56 : vector<1x16xi1> to vector<8x16xi1>
    %58 = vector.broadcast %cst_37 : f32 to vector<8x16xf32>
    %59 = arith.select %57, %58, %55 : vector<8x16xi1>, vector<8x16xf32>
    %c1 = arith.constant 1 : index
    %c0_38 = arith.constant 0 : index
    %c0_39 = arith.constant 0 : index
    %60 = vector.load %arg13[%c1, %c0_38, %c0_39] : memref<4x8x1xf32, #tpu.memory_space<vmem>>, vector<1x8x1xf32>
    %61 = vector.shape_cast %60 : vector<1x8x1xf32> to vector<8x1xf32>
    %cst_40 = arith.constant dense<0xFF800000> : vector<8xf32>
    %62 = vector.multi_reduction <maximumf>, %59, %cst_40 [1] : vector<8x16xf32> to vector<8xf32>
    %63 = vector.shape_cast %62 : vector<8xf32> to vector<8x1xf32>
    %64 = arith.maximumf %61, %63 : vector<8x1xf32>
    %65 = arith.subf %61, %64 : vector<8x1xf32>
    %66 = math.exp %65 : vector<8x1xf32>
    %67 = vector.broadcast %64 : vector<8x1xf32> to vector<8x16xf32>
    %68 = arith.subf %59, %67 : vector<8x16xf32>
    %69 = math.exp %68 : vector<8x16xf32>
    %c1_41 = arith.constant 1 : index
    %c0_42 = arith.constant 0 : index
    %c0_43 = arith.constant 0 : index
    %70 = vector.load %arg14[%c1_41, %c0_42, %c0_43] : memref<4x8x1xf32, #tpu.memory_space<vmem>>, vector<1x8x1xf32>
    %71 = vector.shape_cast %70 : vector<1x8x1xf32> to vector<8x1xf32>
    %72 = arith.mulf %66, %71 : vector<8x1xf32>
    %cst_44 = arith.constant dense<0.000000e+00> : vector<8xf32>
    %73 = vector.multi_reduction <add>, %69, %cst_44 [1] : vector<8x16xf32> to vector<8xf32>
    %74 = vector.shape_cast %73 : vector<8xf32> to vector<8x1xf32>
    %75 = arith.addf %72, %74 : vector<8x1xf32>
    %c1_45 = arith.constant 1 : index
    %c0_46 = arith.constant 0 : index
    %c0_47 = arith.constant 0 : index
    %76 = vector.load %arg14[%c1_45, %c0_46, %c0_47] : memref<4x8x1xf32, #tpu.memory_space<vmem>>, vector<1x8x1xf32>
    %77 = vector.shape_cast %76 : vector<1x8x1xf32> to vector<8x1xf32>
    %78 = vector.shape_cast %75 : vector<8x1xf32> to vector<1x8x1xf32>
    tpu.vector_store %arg14[%c1_45, %c0_46, %c0_47], %78 {strides = array<i32>} : memref<4x8x1xf32, #tpu.memory_space<vmem>>, vector<1x8x1xf32>,
    %79 = arith.truncf %69 : vector<8x16xf32> to vector<8x16xbf16>
    %cst_48 = arith.constant dense<0.000000e+00> : vector<8x8xf32>
    %80 = tpu.matmul %79, %54, %cst_48 {dimension_numbers = #tpu.dot_dimension_numbers<[1], [0], [0], [1], [0, 0, 1, 1], [], []>} : vector<8x16xbf16>, vector<16x8xbf16>, vector<8x8xf32> -> vector<8x8xf32>
    %c0_49 = arith.constant 0 : index
    %c8_50 = arith.constant 8 : index
    %81 = vector.load %arg15[%c0_49, %c8_50] : memref<8x32xf32, #tpu.memory_space<vmem>>, vector<8x8xf32>
    %82 = vector.broadcast %66 : vector<8x1xf32> to vector<8x8xf32>
    %83 = arith.mulf %82, %81 : vector<8x8xf32>
    %84 = arith.addf %83, %80 : vector<8x8xf32>
    %c0_51 = arith.constant 0 : index
    %c8_52 = arith.constant 8 : index
    %85 = vector.load %arg15[%c0_51, %c8_52] : memref<8x32xf32, #tpu.memory_space<vmem>>, vector<8x8xf32>
    tpu.vector_store %arg15[%c0_51, %c8_52], %84 {strides = array<i32>} : memref<8x32xf32, #tpu.memory_space<vmem>>, vector<8x8xf32>,
    %c1_53 = arith.constant 1 : index
    %c0_54 = arith.constant 0 : index
    %c0_55 = arith.constant 0 : index
    %86 = vector.load %arg13[%c1_53, %c0_54, %c0_55] : memref<4x8x1xf32, #tpu.memory_space<vmem>>, vector<1x8x1xf32>
    %87 = vector.shape_cast %86 : vector<1x8x1xf32> to vector<8x1xf32>
    %88 = vector.shape_cast %64 : vector<8x1xf32> to vector<1x8x1xf32>
    tpu.vector_store %arg13[%c1_53, %c0_54, %c0_55], %88 {strides = array<i32>} : memref<4x8x1xf32, #tpu.memory_space<vmem>>, vector<1x8x1xf32>,
    %c0_56 = arith.constant 0 : index
    %c16 = arith.constant 16 : index
    %89 = vector.load %arg12[%c0_56, %c16] : memref<8x32xbf16, #tpu.memory_space<vmem>>, vector<8x8xbf16>
    %90 = vector.extract_strided_slice %10 {offsets = [0, 16], sizes = [16, 8], strides = [1, 1]} : vector<16x32xbf16> to vector<16x8xbf16>
    %91 = vector.extract_strided_slice %11 {offsets = [0, 16], sizes = [16, 8], strides = [1, 1]} : vector<16x32xbf16> to vector<16x8xbf16>
    %cst_57 = arith.constant dense<0.000000e+00> : vector<8x16xf32>
    %92 = tpu.matmul %89, %90, %cst_57 {dimension_numbers = #tpu.dot_dimension_numbers<[1], [1], [0], [0], [0, 0, 1, 0], [], []>} : vector<8x8xbf16>, vector<16x8xbf16>, vector<8x16xf32> -> vector<8x16xf32>
    %cst_58 = arith.constant -3.40282347E+38 : f32
    %93 = vector.shape_cast %14 : vector<1x16xi1> to vector<1x16xi1>
    %94 = vector.broadcast %93 : vector<1x16xi1> to vector<8x16xi1>
    %95 = vector.broadcast %cst_58 : f32 to vector<8x16xf32>
    %96 = arith.select %94, %95, %92 : vector<8x16xi1>, vector<8x16xf32>
    %c2 = arith.constant 2 : index
    %c0_59 = arith.constant 0 : index
    %c0_60 = arith.constant 0 : index
    %97 = vector.load %arg13[%c2, %c0_59, %c0_60] : memref<4x8x1xf32, #tpu.memory_space<vmem>>, vector<1x8x1xf32>
    %98 = vector.shape_cast %97 : vector<1x8x1xf32> to vector<8x1xf32>
    %cst_61 = arith.constant dense<0xFF800000> : vector<8xf32>
    %99 = vector.multi_reduction <maximumf>, %96, %cst_61 [1] : vector<8x16xf32> to vector<8xf32>
    %100 = vector.shape_cast %99 : vector<8xf32> to vector<8x1xf32>
    %101 = arith.maximumf %98, %100 : vector<8x1xf32>
    %102 = arith.subf %98, %101 : vector<8x1xf32>
    %103 = math.exp %102 : vector<8x1xf32>
    %104 = vector.broadcast %101 : vector<8x1xf32> to vector<8x16xf32>
    %105 = arith.subf %96, %104 : vector<8x16xf32>
    %106 = math.exp %105 : vector<8x16xf32>
    %c2_62 = arith.constant 2 : index
    %c0_63 = arith.constant 0 : index
    %c0_64 = arith.constant 0 : index
    %107 = vector.load %arg14[%c2_62, %c0_63, %c0_64] : memref<4x8x1xf32, #tpu.memory_space<vmem>>, vector<1x8x1xf32>
    %108 = vector.shape_cast %107 : vector<1x8x1xf32> to vector<8x1xf32>
    %109 = arith.mulf %103, %108 : vector<8x1xf32>
    %cst_65 = arith.constant dense<0.000000e+00> : vector<8xf32>
    %110 = vector.multi_reduction <add>, %106, %cst_65 [1] : vector<8x16xf32> to vector<8xf32>
    %111 = vector.shape_cast %110 : vector<8xf32> to vector<8x1xf32>
    %112 = arith.addf %109, %111 : vector<8x1xf32>
    %c2_66 = arith.constant 2 : index
    %c0_67 = arith.constant 0 : index
    %c0_68 = arith.constant 0 : index
    %113 = vector.load %arg14[%c2_66, %c0_67, %c0_68] : memref<4x8x1xf32, #tpu.memory_space<vmem>>, vector<1x8x1xf32>
    %114 = vector.shape_cast %113 : vector<1x8x1xf32> to vector<8x1xf32>
    %115 = vector.shape_cast %112 : vector<8x1xf32> to vector<1x8x1xf32>
    tpu.vector_store %arg14[%c2_66, %c0_67, %c0_68], %115 {strides = array<i32>} : memref<4x8x1xf32, #tpu.memory_space<vmem>>, vector<1x8x1xf32>,
    %116 = arith.truncf %106 : vector<8x16xf32> to vector<8x16xbf16>
    %cst_69 = arith.constant dense<0.000000e+00> : vector<8x8xf32>
    %117 = tpu.matmul %116, %91, %cst_69 {dimension_numbers = #tpu.dot_dimension_numbers<[1], [0], [0], [1], [0, 0, 1, 1], [], []>} : vector<8x16xbf16>, vector<16x8xbf16>, vector<8x8xf32> -> vector<8x8xf32>
    %c0_70 = arith.constant 0 : index
    %c16_71 = arith.constant 16 : index
    %118 = vector.load %arg15[%c0_70, %c16_71] : memref<8x32xf32, #tpu.memory_space<vmem>>, vector<8x8xf32>
    %119 = vector.broadcast %103 : vector<8x1xf32> to vector<8x8xf32>
    %120 = arith.mulf %119, %118 : vector<8x8xf32>
    %121 = arith.addf %120, %117 : vector<8x8xf32>
    %c0_72 = arith.constant 0 : index
    %c16_73 = arith.constant 16 : index
    %122 = vector.load %arg15[%c0_72, %c16_73] : memref<8x32xf32, #tpu.memory_space<vmem>>, vector<8x8xf32>
    tpu.vector_store %arg15[%c0_72, %c16_73], %121 {strides = array<i32>} : memref<8x32xf32, #tpu.memory_space<vmem>>, vector<8x8xf32>,
    %c2_74 = arith.constant 2 : index
    %c0_75 = arith.constant 0 : index
    %c0_76 = arith.constant 0 : index
    %123 = vector.load %arg13[%c2_74, %c0_75, %c0_76] : memref<4x8x1xf32, #tpu.memory_space<vmem>>, vector<1x8x1xf32>
    %124 = vector.shape_cast %123 : vector<1x8x1xf32> to vector<8x1xf32>
    %125 = vector.shape_cast %101 : vector<8x1xf32> to vector<1x8x1xf32>
    tpu.vector_store %arg13[%c2_74, %c0_75, %c0_76], %125 {strides = array<i32>} : memref<4x8x1xf32, #tpu.memory_space<vmem>>, vector<1x8x1xf32>,
    %c0_77 = arith.constant 0 : index
    %c24 = arith.constant 24 : index
    %126 = vector.load %arg12[%c0_77, %c24] : memref<8x32xbf16, #tpu.memory_space<vmem>>, vector<8x8xbf16>
    %127 = vector.extract_strided_slice %10 {offsets = [0, 24], sizes = [16, 8], strides = [1, 1]} : vector<16x32xbf16> to vector<16x8xbf16>
    %128 = vector.extract_strided_slice %11 {offsets = [0, 24], sizes = [16, 8], strides = [1, 1]} : vector<16x32xbf16> to vector<16x8xbf16>
    %cst_78 = arith.constant dense<0.000000e+00> : vector<8x16xf32>
    %129 = tpu.matmul %126, %127, %cst_78 {dimension_numbers = #tpu.dot_dimension_numbers<[1], [1], [0], [0], [0, 0, 1, 0], [], []>} : vector<8x8xbf16>, vector<16x8xbf16>, vector<8x16xf32> -> vector<8x16xf32>
    %cst_79 = arith.constant -3.40282347E+38 : f32
    %130 = vector.shape_cast %14 : vector<1x16xi1> to vector<1x16xi1>
    %131 = vector.broadcast %130 : vector<1x16xi1> to vector<8x16xi1>
    %132 = vector.broadcast %cst_79 : f32 to vector<8x16xf32>
    %133 = arith.select %131, %132, %129 : vector<8x16xi1>, vector<8x16xf32>
    %c3 = arith.constant 3 : index
    %c0_80 = arith.constant 0 : index
    %c0_81 = arith.constant 0 : index
    %134 = vector.load %arg13[%c3, %c0_80, %c0_81] : memref<4x8x1xf32, #tpu.memory_space<vmem>>, vector<1x8x1xf32>
    %135 = vector.shape_cast %134 : vector<1x8x1xf32> to vector<8x1xf32>
    %cst_82 = arith.constant dense<0xFF800000> : vector<8xf32>
    %136 = vector.multi_reduction <maximumf>, %133, %cst_82 [1] : vector<8x16xf32> to vector<8xf32>
    %137 = vector.shape_cast %136 : vector<8xf32> to vector<8x1xf32>
    %138 = arith.maximumf %135, %137 : vector<8x1xf32>
    %139 = arith.subf %135, %138 : vector<8x1xf32>
    %140 = math.exp %139 : vector<8x1xf32>
    %141 = vector.broadcast %138 : vector<8x1xf32> to vector<8x16xf32>
    %142 = arith.subf %133, %141 : vector<8x16xf32>
    %143 = math.exp %142 : vector<8x16xf32>
    %c3_83 = arith.constant 3 : index
    %c0_84 = arith.constant 0 : index
    %c0_85 = arith.constant 0 : index
    %144 = vector.load %arg14[%c3_83, %c0_84, %c0_85] : memref<4x8x1xf32, #tpu.memory_space<vmem>>, vector<1x8x1xf32>
    %145 = vector.shape_cast %144 : vector<1x8x1xf32> to vector<8x1xf32>
    %146 = arith.mulf %140, %145 : vector<8x1xf32>
    %cst_86 = arith.constant dense<0.000000e+00> : vector<8xf32>
    %147 = vector.multi_reduction <add>, %143, %cst_86 [1] : vector<8x16xf32> to vector<8xf32>
    %148 = vector.shape_cast %147 : vector<8xf32> to vector<8x1xf32>
    %149 = arith.addf %146, %148 : vector<8x1xf32>
    %c3_87 = arith.constant 3 : index
    %c0_88 = arith.constant 0 : index
    %c0_89 = arith.constant 0 : index
    %150 = vector.load %arg14[%c3_87, %c0_88, %c0_89] : memref<4x8x1xf32, #tpu.memory_space<vmem>>, vector<1x8x1xf32>
    %151 = vector.shape_cast %150 : vector<1x8x1xf32> to vector<8x1xf32>
    %152 = vector.shape_cast %149 : vector<8x1xf32> to vector<1x8x1xf32>
    tpu.vector_store %arg14[%c3_87, %c0_88, %c0_89], %152 {strides = array<i32>} : memref<4x8x1xf32, #tpu.memory_space<vmem>>, vector<1x8x1xf32>,
    %153 = arith.truncf %143 : vector<8x16xf32> to vector<8x16xbf16>
    %cst_90 = arith.constant dense<0.000000e+00> : vector<8x8xf32>
    %154 = tpu.matmul %153, %128, %cst_90 {dimension_numbers = #tpu.dot_dimension_numbers<[1], [0], [0], [1], [0, 0, 1, 1], [], []>} : vector<8x16xbf16>, vector<16x8xbf16>, vector<8x8xf32> -> vector<8x8xf32>
    %c0_91 = arith.constant 0 : index
    %c24_92 = arith.constant 24 : index
    %155 = vector.load %arg15[%c0_91, %c24_92] : memref<8x32xf32, #tpu.memory_space<vmem>>, vector<8x8xf32>
    %156 = vector.broadcast %140 : vector<8x1xf32> to vector<8x8xf32>
    %157 = arith.mulf %156, %155 : vector<8x8xf32>
    %158 = arith.addf %157, %154 : vector<8x8xf32>
    %c0_93 = arith.constant 0 : index
    %c24_94 = arith.constant 24 : index
    %159 = vector.load %arg15[%c0_93, %c24_94] : memref<8x32xf32, #tpu.memory_space<vmem>>, vector<8x8xf32>
    tpu.vector_store %arg15[%c0_93, %c24_94], %158 {strides = array<i32>} : memref<8x32xf32, #tpu.memory_space<vmem>>, vector<8x8xf32>,
    %c3_95 = arith.constant 3 : index
    %c0_96 = arith.constant 0 : index
    %c0_97 = arith.constant 0 : index
    %160 = vector.load %arg13[%c3_95, %c0_96, %c0_97] : memref<4x8x1xf32, #tpu.memory_space<vmem>>, vector<1x8x1xf32>
    %161 = vector.shape_cast %160 : vector<1x8x1xf32> to vector<8x1xf32>
    %162 = vector.shape_cast %138 : vector<8x1xf32> to vector<1x8x1xf32>
    tpu.vector_store %arg13[%c3_95, %c0_96, %c0_97], %162 {strides = array<i32>} : memref<4x8x1xf32, #tpu.memory_space<vmem>>, vector<1x8x1xf32>,
    %c0_i32_98 = arith.constant 0 : i32
    %163 = arith.cmpi eq, %arg2, %c0_i32_98 : i32
    %164 = arith.extui %163 : i1 to i32
    %c0_i32_99 = arith.constant 0 : i32
    %165 = arith.cmpi ne, %164, %c0_i32_99 : i32
    scf.if %165 {
      %c0_100 = arith.constant 0 : index
      %c0_101 = arith.constant 0 : index
      %c0_102 = arith.constant 0 : index
      %166 = vector.load %arg14[%c0_100, %c0_101, %c0_102] : memref<4x8x1xf32, #tpu.memory_space<vmem>>, vector<1x8x1xf32>
      %167 = vector.shape_cast %166 : vector<1x8x1xf32> to vector<8x1xf32>
      %168 = tpu.reciprocal %167 {approx = true} : vector<8x1xf32> -> vector<8x1xf32>
      %c0_103 = arith.constant 0 : index
      %c0_104 = arith.constant 0 : index
      %169 = vector.load %arg15[%c0_103, %c0_104] : memref<8x32xf32, #tpu.memory_space<vmem>>, vector<8x8xf32>
      %170 = vector.broadcast %168 : vector<8x1xf32> to vector<8x8xf32>
      %171 = arith.mulf %169, %170 : vector<8x8xf32>
      %c0_105 = arith.constant 0 : index
      %c0_106 = arith.constant 0 : index
      %172 = vector.load %arg15[%c0_105, %c0_106] : memref<8x32xf32, #tpu.memory_space<vmem>>, vector<8x8xf32>
      tpu.vector_store %arg15[%c0_105, %c0_106], %171 {strides = array<i32>} : memref<8x32xf32, #tpu.memory_space<vmem>>, vector<8x8xf32>,
      %c1_107 = arith.constant 1 : index
      %c0_108 = arith.constant 0 : index
      %c0_109 = arith.constant 0 : index
      %173 = vector.load %arg14[%c1_107, %c0_108, %c0_109] : memref<4x8x1xf32, #tpu.memory_space<vmem>>, vector<1x8x1xf32>
      %174 = vector.shape_cast %173 : vector<1x8x1xf32> to vector<8x1xf32>
      %175 = tpu.reciprocal %174 {approx = true} : vector<8x1xf32> -> vector<8x1xf32>
      %c0_110 = arith.constant 0 : index
      %c8_111 = arith.constant 8 : index
      %176 = vector.load %arg15[%c0_110, %c8_111] : memref<8x32xf32, #tpu.memory_space<vmem>>, vector<8x8xf32>
      %177 = vector.broadcast %175 : vector<8x1xf32> to vector<8x8xf32>
      %178 = arith.mulf %176, %177 : vector<8x8xf32>
      %c0_112 = arith.constant 0 : index
      %c8_113 = arith.constant 8 : index
      %179 = vector.load %arg15[%c0_112, %c8_113] : memref<8x32xf32, #tpu.memory_space<vmem>>, vector<8x8xf32>
      tpu.vector_store %arg15[%c0_112, %c8_113], %178 {strides = array<i32>} : memref<8x32xf32, #tpu.memory_space<vmem>>, vector<8x8xf32>,
      %c2_114 = arith.constant 2 : index
      %c0_115 = arith.constant 0 : index
      %c0_116 = arith.constant 0 : index
      %180 = vector.load %arg14[%c2_114, %c0_115, %c0_116] : memref<4x8x1xf32, #tpu.memory_space<vmem>>, vector<1x8x1xf32>
      %181 = vector.shape_cast %180 : vector<1x8x1xf32> to vector<8x1xf32>
      %182 = tpu.reciprocal %181 {approx = true} : vector<8x1xf32> -> vector<8x1xf32>
      %c0_117 = arith.constant 0 : index
      %c16_118 = arith.constant 16 : index
      %183 = vector.load %arg15[%c0_117, %c16_118] : memref<8x32xf32, #tpu.memory_space<vmem>>, vector<8x8xf32>
      %184 = vector.broadcast %182 : vector<8x1xf32> to vector<8x8xf32>
      %185 = arith.mulf %183, %184 : vector<8x8xf32>
      %c0_119 = arith.constant 0 : index
      %c16_120 = arith.constant 16 : index
      %186 = vector.load %arg15[%c0_119, %c16_120] : memref<8x32xf32, #tpu.memory_space<vmem>>, vector<8x8xf32>
      tpu.vector_store %arg15[%c0_119, %c16_120], %185 {strides = array<i32>} : memref<8x32xf32, #tpu.memory_space<vmem>>, vector<8x8xf32>,
      %c3_121 = arith.constant 3 : index
      %c0_122 = arith.constant 0 : index
      %c0_123 = arith.constant 0 : index
      %187 = vector.load %arg14[%c3_121, %c0_122, %c0_123] : memref<4x8x1xf32, #tpu.memory_space<vmem>>, vector<1x8x1xf32>
      %188 = vector.shape_cast %187 : vector<1x8x1xf32> to vector<8x1xf32>
      %189 = tpu.reciprocal %188 {approx = true} : vector<8x1xf32> -> vector<8x1xf32>
      %c0_124 = arith.constant 0 : index
      %c24_125 = arith.constant 24 : index
      %190 = vector.load %arg15[%c0_124, %c24_125] : memref<8x32xf32, #tpu.memory_space<vmem>>, vector<8x8xf32>
      %191 = vector.broadcast %189 : vector<8x1xf32> to vector<8x8xf32>
      %192 = arith.mulf %190, %191 : vector<8x8xf32>
      %c0_126 = arith.constant 0 : index
      %c24_127 = arith.constant 24 : index
      %193 = vector.load %arg15[%c0_126, %c24_127] : memref<8x32xf32, #tpu.memory_space<vmem>>, vector<8x8xf32>
      tpu.vector_store %arg15[%c0_126, %c24_127], %192 {strides = array<i32>} : memref<8x32xf32, #tpu.memory_space<vmem>>, vector<8x8xf32>,
      %c0_128 = arith.constant 0 : index
      %c0_129 = arith.constant 0 : index
      %194 = vector.load %arg15[%c0_128, %c0_129] : memref<8x32xf32, #tpu.memory_space<vmem>>, vector<8x32xf32>
      %195 = arith.truncf %194 : vector<8x32xf32> to vector<8x32xbf16>
      %c0_130 = arith.constant 0 : index
      %c0_131 = arith.constant 0 : index
      %196 = vector.load %arg8[%c0_130, %c0_131] : memref<32x32xbf16, #tpu.memory_space<vmem>>, vector<32x32xbf16>
      %cst_132 = arith.constant dense<0.000000e+00> : vector<8x32xf32>
      %197 = tpu.matmul %195, %196, %cst_132 {dimension_numbers = #tpu.dot_dimension_numbers<[1], [0], [0], [1], [0, 0, 1, 1], [], []>} : vector<8x32xbf16>, vector<32x32xbf16>, vector<8x32xf32> -> vector<8x32xf32>
      %c0_133 = arith.constant 0 : index
      %c0_134 = arith.constant 0 : index
      %198 = vector.load %arg9[%c0_133, %c0_134] : memref<1x32xf32, #tpu.memory_space<vmem>>, vector<1x32xf32>
      %199 = vector.broadcast %198 : vector<1x32xf32> to vector<8x32xf32>
      %200 = arith.addf %197, %199 : vector<8x32xf32>
      %c0_135 = arith.constant 0 : index
      %c0_136 = arith.constant 0 : index
      %c0_137 = arith.constant 0 : index
      %201 = vector.load %arg11[%c0_135, %c0_136, %c0_137] : memref<1x8x32xf32, #tpu.memory_space<vmem>>, vector<1x8x32xf32>
      %202 = vector.shape_cast %201 : vector<1x8x32xf32> to vector<8x32xf32>
      %203 = vector.shape_cast %200 : vector<8x32xf32> to vector<1x8x32xf32>
      tpu.vector_store %arg11[%c0_135, %c0_136, %c0_137], %203 {strides = array<i32>} : memref<1x8x32xf32, #tpu.memory_space<vmem>>, vector<1x8x32xf32>,
    } else {
    }
    return
  }
  func.func @transform_0(%arg0: i32, %arg1: i32, %arg2: i32) -> (i32, i32, i32) {
    %c0_i32 = arith.constant 0 : i32
    %c0_i32_0 = arith.constant 0 : i32
    return %arg0, %arg1, %c0_i32 : i32, i32, i32
  }
  func.func @transform_1(%arg0: i32, %arg1: i32, %arg2: i32) -> (i32, i32, i32) {
    %c0_i32 = arith.constant 0 : i32
    %c0_i32_0 = arith.constant 0 : i32
    return %arg0, %arg2, %c0_i32 : i32, i32, i32
  }
  func.func @transform_2(%arg0: i32, %arg1: i32, %arg2: i32) -> (i32, i32) {
    %c0_i32 = arith.constant 0 : i32
    %c0_i32_0 = arith.constant 0 : i32
    %c0_i32_1 = arith.constant 0 : i32
    return %c0_i32, %c0_i32_0 : i32, i32
  }
  func.func @transform_3(%arg0: i32, %arg1: i32, %arg2: i32) -> (i32, i32) {
    %c0_i32 = arith.constant 0 : i32
    %c0_i32_0 = arith.constant 0 : i32
    %c0_i32_1 = arith.constant 0 : i32
    return %c0_i32, %c0_i32_0 : i32, i32
  }
  func.func @transform_4(%arg0: i32, %arg1: i32, %arg2: i32) -> (i32, i32) {
    %c0_i32 = arith.constant 0 : i32
    %c0_i32_0 = arith.constant 0 : i32
    %c0_i32_1 = arith.constant 0 : i32
    return %c0_i32, %c0_i32_0 : i32, i32
  }
  func.func @transform_5(%arg0: i32, %arg1: i32, %arg2: i32) -> (i32, i32) {
    %c0_i32 = arith.constant 0 : i32
    %c0_i32_0 = arith.constant 0 : i32
    %c0_i32_1 = arith.constant 0 : i32
    return %c0_i32, %c0_i32_0 : i32, i32
  }
  func.func @transform_6(%arg0: i32, %arg1: i32, %arg2: i32) -> (i32, i32) {
    %c0_i32 = arith.constant 0 : i32
    %c0_i32_0 = arith.constant 0 : i32
    %c0_i32_1 = arith.constant 0 : i32
    return %c0_i32, %c0_i32_0 : i32, i32
  }
  func.func @transform_7(%arg0: i32, %arg1: i32, %arg2: i32) -> (i32, i32, i32) {
    %c0_i32 = arith.constant 0 : i32
    %c0_i32_0 = arith.constant 0 : i32
    return %arg0, %c0_i32, %arg2 : i32, i32, i32
  }
  func.func @transform_8(%arg0: i32, %arg1: i32, %arg2: i32) -> (i32, i32, i32) {
    %c0_i32 = arith.constant 0 : i32
    %c0_i32_0 = arith.constant 0 : i32
    return %arg0, %arg1, %c0_i32 : i32, i32, i32
  }
}

</mosaic_0001>

<bundles_post_ra>
// kernel: tpu_custom_call.1
= control target key start
LH: loop header
LB: loop body
LE: loop exit
PB: predicated region body
PF: predicated region fallthrough
CT: control target
= control target key end

     0   :  { %s2587_s0 = inlined_call_operand.hbm [shape: f32[2,8,32], index: 0, kind: input, shape index: {}]   ;;  %s2588_s1 = inlined_call_operand.hbm [shape: f32[2,16,32], index: 1, kind: input, shape index: {}]   ;;  %s2589_s2 = inlined_call_operand.hbm [shape: bf16[32,32], index: 2, kind: input, shape index: {}]   ;;  %s2590_s3 = inlined_call_operand.vmem [shape: bf16[32,32], index: 3, kind: input, shape index: {}]   ;;  %s2591_s4 = inlined_call_operand.hbm [shape: bf16[32,32], index: 4, kind: input, shape index: {}]   ;;  %s2592_s5 = inlined_call_operand.hbm [shape: bf16[32,32], index: 5, kind: input, shape index: {}]   ;;  %s2593_s6 = inlined_call_operand.vmem [shape: f32[1,32], index: 6, kind: input, shape index: {}]   ;;  %s2594_s7 = inlined_call_operand.vmem [shape: s32[2,1,16], index: 7, kind: input, shape index: {}]   ;;  %s2595_s8 = inlined_call_operand.hbm [shape: f32[2,8,32], index: 8, kind: output, shape index: {}]  }
   0x1   :  { %2602 = sst [smem:[#allocation23_spill]] %s2587_s0 }
   0x2   :  { %2603 = sst [smem:[#allocation24_spill]] %s2589_s2 }
   0x3   :  { %2604 = sst [smem:[#allocation25_spill]] %s2593_s6 }
   0x4   :  { %2605 = sst [smem:[#allocation26_spill]] %s2595_s8 }
   0x5   :  { %13 = vsyncpa [#allocation7], 0 }
   0x6   :  { %15 = vsyncpa [#allocation7 + $0x1], 0 }
   0x7   :  { %16 = vsyncpa [#allocation10], 0 }
   0x8   :  { %18 = vsyncpa [#allocation10 + $0x1], 0 }
   0x9   :  { %19 = vsyncpa [#allocation13], 0 }
   0xa   :  { %20 = vsyncpa [#allocation8], 0 }
   0xb   :  { %22 = vsyncpa [#allocation8 + $0x1], 0  ;;  %s2111_s27 = smov 0   ;;  %s2113_s28 = smov 0  }
   0xc   :  { %s2115_s29 = smov 0   ;;  %s2117_s30 = smov 0  }
   0xd   :  { %s2119_s9 = smov 0   ;;  %s2121_s10 = smov 0  }
   0xe LB: > { %2606 = sst [smem:[#allocation21_spill]] %s2024_s27  ;;  %s2142_s11 = sadd.s32 4294967295, %s2044_s10   ;;  %s2044_s10 = sphi %s2121_s10, %s28_s10   ;;  %s2040_s9 = sphi %s2119_s9, %s2635_s9   ;;  %s2036_s30 = sphi %s2117_s30, %s2634_s30   ;;  %s2032_s29 = sphi %s2115_s29, %s2633_s29   ;;  %s2028_s28 = sphi %s2113_s28, %s2632_s28   ;;  %s2024_s27 = sphi %s2111_s27, %s2631_s27  }
   0xf   : > { %s1502_s12 = sadd.s32 4294967294, %s2044_s10   ;;  %p69_p0 = scmp.ne.s32.totalorder %s2028_s28, %s2024_s27 }
  0x10   : > { %p2596_p1 = scmp.eq.s32.totalorder %s2142_s11, 0  ;;  %p262_p3 = scmp.eq.s32.totalorder %s1502_s12, 1 }
  0x11   : > { %p1503_p5 = scmp.ge.s32.totalorder %s2044_s10, 1  ;;  %p269_p7 = scmp.lt.s32.totalorder %s2044_s10, 3 }
  0x12   : > { %p2151_p4 = por %p2596_p1, %p69_p0  ;;  %p2156_p6 = por %p262_p3, %p69_p0 }
  0x13   : > { %p2161_p8 = pnand %p1503_p5, %p269_p7  ;;  %s2046_s16 = smov [#allocation11]  }
  0x14   : > { %s2607_s13 = scalar_select %p2151_p4, 1, 0 }
  0x15   : > { %s2608_s14 = scalar_select %p2156_p6, 1, 0 }
  0x16   : > { %s2610_s15 = scalar_select %p2161_p8, 1, 0 }
  0x17   : > { %2609 = sst [smem:[#allocation22_spill]] %s2608_s14  ;;  %s281_s17 = sshll.u32 %s2046_s16, 4  ;;  %s2165_s17 = int_to_ptr.vmem [resolvable:$true] %s281_s17 }
  0x18   : > { %p1675_p9 = pneg %p2161_p8  ;;  %s2047_s19 = smov [#allocation12]  }
  0x19   : > { %s297_s20 = sshll.u32 %s2047_s19, 4  ;;  %s2048_s21 = smov [#allocation14]   ;;  %s2176_s20 = int_to_ptr.vmem [resolvable:$true] %s297_s20 }
  0x1a   : > { %p2172_p11 = pnand %p1675_p9, %p2596_p1  ;;  %s2178_s22 = sshll.u32 %s2048_s21, 4  ;;  %s311_s22 = int_to_ptr.vmem [resolvable:$true] %s2178_s22 }
  0x1b   : > { %s2612_s2 = sld [smem:[#allocation24_spill]] }
  0x1c   : > { %p2188_p13 = pneg %p2172_p11 }
  0x21   : > { %s1806_s25 = scalar_lea.hbm %s2612_s2, 256 }
  0x22   : > { %p1807_p12 = scmp.ne.s32.totalorder %s2612_s2, %s1806_s25  ;;  %p1813_p5 = scmp.lt.u32.totalorder %s1806_s25, %s2612_s2 }
  0x24   : > { %p1809_p0 = pnand %p2188_p13, %p1807_p12 }
  0x26   : > { %p1810_p3 = pneg %p1809_p0 }
  0x28   : > { %p1815_p7 = pnand %p1813_p5, %p1810_p3 }
  0x2a   : > { %1818 = shalt.err (!%p1815_p7)
}
  0x2b   : > { %s1819_s23 = scalar_lea.vmem %s2165_s17, 256  ;;  %p1827_p2 = scmp.lt.s32.totalorder %s2165_s17, %s2165_s17 }
  0x2c   : > { %p1820_p9 = scmp.ne.s32.totalorder %s2165_s17, %s1819_s23  ;;  %p1828_p6 = scmp.lt.s32.totalorder %s1819_s23, %s1819_s23 }
  0x2e   : > { %p1822_p10 = pnand %p1820_p9, %p2188_p13  ;;  %p1829_p12 = por %p1828_p6, %p1827_p2 }
  0x30   : > { %p1823_p1 = pneg %p1822_p10 }
  0x32   : > { %p1830_p0 = pnand %p1829_p12, %p1823_p1 }
  0x34   : > { %1833 = shalt.err (!%p1830_p0)
}
  0x35   : > { %s2049_s24 = smov 64   ;;  %s2050_s25 = smov 4  }
  0x36   : > { %1678 = dma.hbm_to_vmem [thread:$0]  (!%p2172_p11), %s2612_s2, 256, %s2165_s17, [#allocation10], %s2049_s24, %s2049_s24, %s2050_s25  }
  0x37   : > { %s1834_s23 = scalar_lea.hbm %s2591_s4, 256 }
  0x38   : > { %p1835_p1 = scmp.ne.s32.totalorder %s2591_s4, %s1834_s23  ;;  %p1841_p10 = scmp.lt.u32.totalorder %s1834_s23, %s2591_s4 }
  0x3a   : > { %p1837_p2 = pnand %p1835_p1, %p2188_p13 }
  0x3c   : > { %p1838_p6 = pneg %p1837_p2 }
  0x3e   : > { %p1843_p3 = pnand %p1841_p10, %p1838_p6 }
  0x40   : > { %1846 = shalt.err (!%p1843_p3)
}
  0x41   : > { %s1847_s17 = scalar_lea.vmem %s2176_s20, 256  ;;  %p1855_p12 = scmp.lt.s32.totalorder %s2176_s20, %s2176_s20 }
  0x42   : > { %p1848_p5 = scmp.ne.s32.totalorder %s2176_s20, %s1847_s17  ;;  %p1856_p0 = scmp.lt.s32.totalorder %s1847_s17, %s1847_s17 }
  0x44   : > { %p1850_p7 = pnand %p1848_p5, %p2188_p13  ;;  %p1857_p1 = por %p1856_p0, %p1855_p12 }
  0x46   : > { %p1851_p9 = pneg %p1850_p7 }
  0x48   : > { %p1858_p2 = pnand %p1857_p1, %p1851_p9 }
  0x4a   : > { %1861 = shalt.err (!%p1858_p2)
}
  0x4b   : > { %1681 = dma.hbm_to_vmem [thread:$0]  (!%p2172_p11), %s2591_s4, 256, %s2176_s20, [#allocation13], %s2049_s24, %s2049_s24, %s2050_s25  }
  0x4c   : > { %s1862_s26 = scalar_lea.hbm %s2592_s5, 256 }
  0x4d   : > { %p1863_p6 = scmp.ne.s32.totalorder %s2592_s5, %s1862_s26  ;;  %p1869_p5 = scmp.lt.u32.totalorder %s1862_s26, %s2592_s5 }
  0x4f   : > { %p1865_p10 = pnand %p1863_p6, %p2188_p13 }
  0x51   : > { %p1866_p3 = pneg %p1865_p10 }
  0x53   : > { %p1871_p7 = pnand %p1869_p5, %p1866_p3 }
  0x55   : > { %1874 = shalt.err (!%p1871_p7)
}
  0x56   : > { %s1875_s17 = scalar_lea.vmem %s311_s22, 256  ;;  %p1883_p1 = scmp.lt.s32.totalorder %s311_s22, %s311_s22 }
  0x57   : > { %p1876_p9 = scmp.ne.s32.totalorder %s311_s22, %s1875_s17  ;;  %p1884_p2 = scmp.lt.s32.totalorder %s1875_s17, %s1875_s17 }
  0x59   : > { %p1878_p12 = pnand %p1876_p9, %p2188_p13  ;;  %p1885_p4 = por %p1884_p2, %p1883_p1 }
  0x5b   : > { %p1879_p0 = pneg %p1878_p12 }
  0x5d   : > { %p1886_p8 = pnand %p1885_p4, %p1879_p0 }
  0x5f   : > { %1889 = shalt.err (!%p1886_p8)
}
  0x60   : > { %1684 = dma.hbm_to_vmem [thread:$0]  (!%p2172_p11), %s2592_s5, 256, %s311_s22, [#allocation13], %s2049_s24, %s2049_s24, %s2050_s25  }
  0x61   : > { %s56_s16 = sadd.s32 1, %s2032_s29  ;;  %s47_s18 = sadd.s32 1, %s2040_s9 }
  0x62   : > { %p63_p4 = scmp.ne.s32.totalorder %s2032_s29, %s2028_s28  ;;  %p49_p8 = scmp.ge.s32.totalorder %s47_s18, 2 }
  0x63   : > { %p64_p13 = scmp.eq.s32.totalorder %s2044_s10, 0  ;;  %p2614_p6 = scmp.eq.s32.totalorder %s2142_s11, 1 }
  0x64   : > { %p1699_p3 = scmp.lt.s32.totalorder %s2044_s10, 2  ;;  %s2637_s18 = smov (%p49_p8, %s47_s18), 0 }
  0x65   : > { %p2267_p10 = por %p2614_p6, %p63_p4  ;;  %p65_p5 = por %p64_p13, %p63_p4 }
  0x66   : > { %s2275_s27 = sand.u32 1, %s2032_s29   ;;  %s51_s22 = ssub.s32 %s2040_s9, %s2637_s18 }
  0x67   : > { %p54_p11 = scmp.eq.s32.totalorder %s51_s22, 0  ;;  %s1508_s24 = sshll.u32 %s2275_s27, 3 }
  0x68   : > { %s1509_s25 = sshll.u32 %s2040_s9, 7  ;;  %s2616_s0 = sld [smem:[#allocation23_spill]] }
  0x69   : > { %s2282_s14 = scalar_select %p54_p11, %s2032_s29, %s56_s16  }
  0x6a   : > { %s331_s21 = scalar_lea.vmem [#allocation6], %s1508_s24  ;;  %p2293_p7 = pnand %p1699_p3, %p65_p5 }
  0x6b   : > { %s339_s23 = sshll.u32 %s331_s21, 4  ;;  %s1510_s20 = sshll.u32 %s2275_s27, 4  ;;  %s2289_s23 = int_to_ptr.vmem [resolvable:$true] %s339_s23 }
  0x6c   : > { %s328_s16 = scalar_lea.sflag [#allocation7], %s2275_s27  ;;  %p1892_p12 = pneg %p2293_p7 }
  0x6e   : > { %s2287_s19 = scalar_lea.hbm %s2616_s0, %s1509_s25  ;;  %s1895_s26 = scalar_lea.hbm %s2616_s0, 256 }
  0x6f   : > { %s1890_s22 = scalar_lea.hbm %s2287_s19, 128  ;;  %p1896_p2 = scmp.lt.u32.totalorder %s2287_s19, %s2616_s0 }
  0x70   : > { %p1891_p9 = scmp.ne.s32.totalorder %s2287_s19, %s1890_s22  ;;  %p1897_p4 = scmp.lt.u32.totalorder %s1895_s26, %s1890_s22 }
  0x71   : > { %p1899_p13 = scmp.lt.u32.totalorder %s1890_s22, %s2287_s19 }
  0x72   : > { %p1893_p0 = pnand %p1892_p12, %p1891_p9  ;;  %p1898_p8 = por %p1897_p4, %p1896_p2 }
  0x74   : > { %p1894_p1 = pneg %p1893_p0  ;;  %p1900_p6 = por %p1899_p13, %p1898_p8 }
  0x76   : > { %p1901_p3 = pnand %p1900_p6, %p1894_p1 }
  0x78   : > { %1904 = shalt.err (!%p1901_p3)
}
  0x79   : > { %s1905_s6 = scalar_lea.vmem %s2289_s23, 128  ;;  %s2051_s24 = smov [#allocation6]  }
  0x7a   : > { %p1906_p5 = scmp.ne.s32.totalorder %s2289_s23, %s1905_s6  ;;  %s1910_s25 = sshll.u32 %s2051_s24, 4  ;;  %s1911_s25 = int_to_ptr.vmem [resolvable:$false] %s1910_s25 }
  0x7b   : > { %s1912_s12 = scalar_lea.vmem %s1911_s25, 256  ;;  %p1913_p0 = scmp.lt.s32.totalorder %s2289_s23, %s1911_s25 }
  0x7c   : > { %p1908_p11 = pnand %p1906_p5, %p1892_p12  ;;  %p1914_p2 = scmp.lt.s32.totalorder %s1912_s12, %s1905_s6 }
  0x7e   : > { %p1909_p9 = pneg %p1908_p11  ;;  %p1915_p4 = por %p1914_p2, %p1913_p0 }
  0x80   : > { %p1916_p8 = pnand %p1915_p4, %p1909_p9 }
  0x82   : > { %1919 = shalt.err (!%p1916_p8)
}
  0x83   : > { %1688 = dma.hbm_to_vmem [thread:$0]  (!%p2293_p7), %s2287_s19, 128, %s2289_s23, %s328_s16  }
  0x84   : > { %s350_s22 = scalar_lea.vmem [#allocation9], %s1510_s20  ;;  %s346_s21 = sand.u32 1, %s2044_s10  }
  0x85   : > { %s359_s26 = sshll.u32 %s350_s22, 4  ;;  %s2618_s24 = sshll.u32 %s2040_s9, 8  ;;  %s2328_s26 = int_to_ptr.vmem [resolvable:$true] %s359_s26 }
  0x86   : > { %s2335_s12 = scalar_lea.hbm %s2588_s1, %s2618_s24  ;;  %s2337_s0 = scalar_lea.sflag [#allocation10], %s346_s21 }
  0x87   : > { %s1920_s2 = scalar_lea.hbm %s2335_s12, 256  ;;  %s1925_s23 = scalar_lea.hbm %s2588_s1, 512 }
  0x88   : > { %p1921_p1 = scmp.ne.s32.totalorder %s2335_s12, %s1920_s2  ;;  %p1926_p3 = scmp.lt.u32.totalorder %s2335_s12, %s2588_s1 }
  0x89   : > { %p1927_p5 = scmp.lt.u32.totalorder %s1925_s23, %s1920_s2  ;;  %p1929_p9 = scmp.lt.u32.totalorder %s1920_s2, %s2335_s12 }
  0x8a   : > { %p1923_p13 = pnand %p1921_p1, %p1892_p12 }
  0x8b   : > { %p1928_p11 = por %p1927_p5, %p1926_p3 }
  0x8c   : > { %p1924_p6 = pneg %p1923_p13 }
  0x8d   : > { %p1930_p0 = por %p1929_p9, %p1928_p11 }
  0x8f   : > { %p1931_p2 = pnand %p1930_p0, %p1924_p6 }
  0x91   : > { %1934 = shalt.err (!%p1931_p2)
}
  0x92   : > { %s1935_s22 = scalar_lea.vmem %s2328_s26, 256  ;;  %s2052_s21 = smov [#allocation9]  }
  0x93   : > { %p1936_p4 = scmp.ne.s32.totalorder %s2328_s26, %s1935_s22  ;;  %s1940_s24 = sshll.u32 %s2052_s21, 4  ;;  %s1941_s24 = int_to_ptr.vmem [resolvable:$false] %s1940_s24 }
  0x94   : > { %s1942_s6 = scalar_lea.vmem %s1941_s24, 512  ;;  %p1943_p13 = scmp.lt.s32.totalorder %s2328_s26, %s1941_s24 }
  0x95   : > { %p1938_p8 = pnand %p1936_p4, %p1892_p12  ;;  %p1944_p3 = scmp.lt.s32.totalorder %s1942_s6, %s1935_s22 }
  0x97   : > { %p1939_p1 = pneg %p1938_p8  ;;  %p1945_p5 = por %p1944_p3, %p1943_p13 }
  0x99   : > { %p1946_p11 = pnand %p1945_p5, %p1939_p1 }
  0x9b   : > { %1949 = shalt.err (!%p1946_p11)
}
  0x9c   : > { %s2053_s2 = smov 128   ;;  %s2054_s25 = smov 8  }
  0x9d   : > { %1691 = dma.hbm_to_vmem [thread:$0]  (!%p2293_p7), %s2335_s12, 256, %s2328_s26, %s2337_s0, %s2053_s2, %s2053_s2, %s2054_s25  }
  0x9e   : > { %p2619_p12 = scmp.ne.s32.totalorder %s2610_s15, 0 }
  0x9f   : > { %s2366_s27 = sand.u32 (!%p2619_p12), 1, %s2028_s28   ;;  %p2620_p6 = scmp.ne.s32.totalorder (!%p2619_p12), %s2607_s13, 0 }
  0xa0   : > { %380 = sbr.rel (%p2619_p12) target bundleno = 1660 (0x67c), region = 52  ;;  %s1514_s19 = sshll.u32 (!%p2619_p12), %s2366_s27, 3 }
  0xa1   : > { %s383_s23 = scalar_lea.sflag (!%p2619_p12), [#allocation7], %s2366_s27  ;;  %s386_s20 = scalar_lea.vmem (!%p2619_p12), [#allocation6], %s1514_s19 }
  0xa7   : > { %2003 = dma.done.wait (%p2620_p6), %s383_s23, 128  }
  0xa8   : > { %2005 = vsyncadd (%p2620_p6), %s383_s23, 4294967168  ;;  %s391_s0 = sand.u32 1, %s2142_s11   ;;  %s1515_s15 = sshll.u32 %s2366_s27, 4 }
  0xa9   : > { %s392_s17 = scalar_lea.sflag [#allocation10], %s391_s0  ;;  %s395_s26 = scalar_lea.vmem [#allocation9], %s1515_s15 }
  0xaa   : > { %2007 = dma.done.wait (%p2620_p6), %s392_s17, 256  }
  0xab   : > { %2009 = vsyncadd (%p2620_p6), %s392_s17, 4294967040  ;;  %p2621_p7 = scmp.eq.s32.totalorder %s2142_s11, 0 }
  0xad   : > { %2011 = dma.done.wait (%p2621_p7), [#allocation10], 256   ;;  %p2622_p9 = pmov %p2621_p7 }
  0xae   : > { %p2623_p0 = pmov %p2621_p7 }
  0xaf   : > { %2013 = vsyncadd (%p2622_p9), [#allocation10], 4294967040 }
  0xb0   : > { %2015 = dma.done.wait (%p2623_p0), [#allocation13], 512   ;;  %p2624_p2 = pmov %p2623_p0 }
  0xb1   : > { %vm481_vm0 = vcmask 261120   ;;  %v2055_v0 = vmov 0.0   ;;  %vm2056_vm1 = vmmov 0   ;;  %v1771_v1 = vld [vmem:[#allocation11] sm:$0xff]   ;;  %v1773_v3 = vld [vmem:[#allocation11 + $0x8] sm:$0xff]   ;;  %v463_v5 = vld [vmem:[%s386_s20] sm:$0xff]  ;;  %v712_v37 = vlaneseq }
  0xb2   : > { %2017 = vsyncadd (%p2624_p2), [#allocation13], 4294966784  ;;  %1577 = vmatprep.subr.bf16.mxu0 %v2055_v0  ;;  %1585 = vmatprep.subr.bf16.mxu1 %v2055_v0  ;;  %537 = vst.msk [vmem:[#allocation5] sm:$0xff] %vm481_vm0, %v2055_v0  ;;  %v1772_v2 = vld [vmem:[%s2590_s3] sm:$0xff]   ;;  %v1774_v4 = vld [vmem:[%s2590_s3 + $0x8] sm:$0xff]   ;;  %v464_v8 = vpack.c.bf16 %v463_v5, %v463_v5  ;;  %vm526_vm2 = vcmask 257024  }
  0xb3   : > { %1581 = vmatprep.mubr.msk.bf16.mxu0 %vm2056_vm1, %v2055_v0  ;;  %1589 = vmatprep.mubr.msk.bf16.mxu1 %vm2056_vm1, %v2055_v0  ;;  %v538_v6 = vld [vmem:[%s395_s26] sm:$0xff]  ;;  %v539_v7 = vld [vmem:[%s395_s26 + $0x8] sm:$0xff]  ;;  %vm664_vm3 = vcmask 64512   ;;  %s2057_s22 = smov 112   ;;  %s2058_s21 = smov 120   ;;  %v2060_v25 = vmov 0  }
  0xb4   : > { %1578 = vmatpush3.bf16.msra.mxu0 %v1771_v1  ;;  %1586 = vmatpush3.bf16.msra.mxu1 %v1772_v2  ;;  %v540_v9 = vpack.c.bf16 %v539_v7, %v538_v6  ;;  %s2059_s24 = smov 104   ;;  %v1778_v26 = vld [vmem:[#allocation12] sm:$0xff]   ;;  %v1779_v27 = vld [vmem:[#allocation12 + $0x8] sm:$0xff]   ;;  %p452_p4 = scmp.lt.s32.totalorder %s2036_s30, 1  ;;  %v713_v39 = vshrl.u32 %v712_v37, 7  ;;  %vm719_vm6 = vcmask 130048  }
  0xb5   : > { %1579 = vmatprep.subr.bf16.mxu0 %v2055_v0  ;;  %1587 = vmatprep.subr.bf16.mxu1 %v2055_v0  ;;  %vm528_vm7 = vcmask 7168   ;;  %v2061_v49 = vmov -inf   ;;  %s2062_s20 = smov 8   ;;  %s2063_s0 = smov 16   ;;  %vm938_vm8 = vcmask 130112   ;;  %vm1080_vm9 = vcmask 195712  }
  0xb6   : > { %1769 = vset.pattern.permute.xlu1 %v2060_v25  ;;  %1770 = vset.pattern.permute.xlu0 %v2060_v25  ;;  %s453_s6 = scalar_select %p452_p4, %s2036_s30, 1  ;;  %v714_v40 = vsub.s32 0, %v713_v39  ;;  %529 = vst.msk [vmem:[#allocation3] sm:$0xff] %vm528_vm7, %v2061_v49  ;;  %530 = vst.msk [vmem:[#allocation3 + $0x8] sm:$0xff] %vm528_vm7, %v2061_v49  ;;  %vm1222_vm10 = vcmask 261312  }
  0xb7   : > { %531 = vst.msk [vmem:[#allocation3 + $0x10] sm:$0xff] %vm528_vm7, %v2061_v49  ;;  %532 = vst.msk [vmem:[#allocation3 + $0x18] sm:$0xff] %vm528_vm7, %v2061_v49  ;;  %s2064_s15 = smov 24   ;;  %s2625_s13 = sld [smem:[#allocation25_spill]] }
  0xb8   : > { %1580 = vmatpush3.bf16.msra.mxu0 %v1773_v3  ;;  %1588 = vmatpush3.bf16.msra.mxu1 %v1774_v4  ;;  %s457_s23 = scalar_lea.vmem %s2594_s7, %s453_s6  ;;  %533 = vst.msk [vmem:[#allocation4] sm:$0xff] %vm528_vm7, %v2055_v0  ;;  %534 = vst.msk [vmem:[#allocation4 + $0x8] sm:$0xff] %vm528_vm7, %v2055_v0  ;;  %s1545_s11 = sshll.u32 %s2036_s30, 7 }
  0xb9   : > { %1593 = vmatprep.subr.bf16.mxu0 %v2055_v0  ;;  %1601 = vmatprep.subr.bf16.mxu1 %v2055_v0  ;;  %v661_v38 = vld [vmem:[%s457_s23] sm:$0x1]  ;;  %535 = vst.msk [vmem:[#allocation4 + $0x10] sm:$0xff] %vm528_vm7, %v2055_v0  ;;  %536 = vst.msk [vmem:[#allocation4 + $0x18] sm:$0xff] %vm528_vm7, %v2055_v0  ;;  %s450_s12 = scalar_lea.vmem [#allocation15], %s1514_s19  ;;  %s1338_s30 = scalar_lea.sflag [#allocation8], %s2366_s27 }
  0xba   : > { %vm662_vm4 = vcmp.ne.s32.totalorder %v661_v38, 0  ;;  %s1352_s16 = sshll.u32 %s450_s12, 4  ;;  %s2065_s2 = smov [#allocation15]   ;;  %s2539_s16 = int_to_ptr.vmem [resolvable:$true] %s1352_s16 }
  0xbb   : > { %1582 = vmatmul.mubr.msk.bf16.vlgmr.msra.gmra.mrb[0].mxu0 %vm481_vm0, %v464_v8  ;;  %1590 = vmatmul.mubr.msk.bf16.vlgmr.msra.gmra.mrb[0].mxu1 %vm481_vm0, %v540_v9  ;;  %v711_v41 = vsel %vm662_vm4, 1, %v2060_v25  ;;  %s1950_s19 = scalar_lea.vmem %s2539_s16, 128  ;;  %s1954_s25 = sshll.u32 %s2065_s2, 4  ;;  %s1955_s25 = int_to_ptr.vmem [resolvable:$false] %s1954_s25 }
  0xbc   : > { %1597 = vmatprep.mubr.msk.bf16.mxu0 %vm2056_vm1, %v2055_v0  ;;  %1603 = vmatprep.mubr.msk.bf16.mxu1 %vm2056_vm1, %v2055_v0  ;;  %v715_v42 = vrot.slane %v711_v41, %v714_v40  ;;  %p1951_p8 = scmp.ne.s32.totalorder %s2539_s16, %s1950_s19  ;;  %s1956_s23 = scalar_lea.vmem %s1955_s25, 256 }
  0xbd   : > { %1594 = vmatpush3.bf16.msra.mxu0 %v1778_v26  ;;  %v2482_v6 = vld [vmem:[#allocation3] sm:$0xff]  ;;  %p1957_p3 = scmp.lt.s32.totalorder %s2539_s16, %s1955_s25  ;;  %p1958_p5 = scmp.lt.s32.totalorder %s1956_s23, %s1950_s19 }
  0xbe   : > { %1595 = vmatprep.subr.bf16.mxu0 %v2055_v0  ;;  %vm716_vm5 = vcmp.eq.s32.totalorder %v715_v42, 1  ;;  %p1952_p1 = pnand %p1951_p8, %p2267_p10 }
  0xbf   : > { %p1959_p11 = por %p1958_p5, %p1957_p3 }
  0xc0   : > { %p1953_p13 = pneg %p1952_p1 }
  0xc1   : > { %1596 = vmatpush3.bf16.msra.mxu0 %v1779_v27 }
  0xc2   : > { %1607 = vmatprep.subr.bf16.mxu0 %v2055_v0  ;;  %p1960_p12 = pnand %p1959_p11, %p1953_p13 }
  0xc4   : > { %1598 = vmatmul.mubr.msk.bf16.vlgmr.msra.gmra.mrb[4].mxu0 %vm481_vm0, %v540_v9 }
  0xc5   : > { %1609 = vmatprep.mubr.msk.bf16.mxu0 %vm2056_vm1, %v2055_v0 }
 0x18e   : > { %v519_v10 = vpop.f32.mrb[0].mxu0  ;;  %v595_v12 = vpop.f32.mrb[0].mxu1 }
 0x18f   : > { %v525_v11 = vpack.c.bf16 %v519_v10, %v519_v10  ;;  %v1583_v13 = vpop.f32.mrb[1].mxu0  ;;  %v1591_v14 = vpop.f32.mrb[1].mxu1 }
 0x190   : > { %v522_v15 = vpop.f32.mrb[2].mxu0  ;;  %v598_v16 = vpop.f32.mrb[2].mxu1  ;;  %v854_v14 = vld [vmem:[#allocation3 + $0x8] sm:$0xff] }
 0x191   : > { %527 = vst.msk [vmem:[#allocation2] sm:$0xf] %vm526_vm2, %v525_v11  ;;  %v1584_v17 = vpop.f32.mrb[3].mxu0  ;;  %v659_v18 = vpack.c.bf16 %v598_v16, %v595_v12  ;;  %v1592_v19 = vpop.f32.mrb[3].mxu1 }
 0x193   : > { %947 = vrot.lane.b32.xlu1 %v659_v18, %s2057_s22  ;;  %804 = vrot.lane.b32.xlu0 %v659_v18, %s2058_s21  ;;  %v669_v20 = vsel %vm664_vm3, %v659_v18, 0 }
 0x194   : > { %1602 = vmatpush3.bf16.xpose.msra.mxu1 %v669_v20 }
 0x195   : > { %1613 = vmatprep.subr.bf16.mxu1 %v2055_v0 }
 0x197   : > { %v652_v5 = vpop.f32.mrb[4].mxu0 }
 0x198   : > { %v1775_v21 = vld [vmem:[#allocation2] ss:$0 sps:$4 sm:$0xff]   ;;  %v1599_v7 = vpop.f32.mrb[5].mxu0 }
 0x199   : > { %v1776_v22 = vld [vmem:[#allocation2] ss:$0 sps:$4 sm:$0xff]   ;;  %945 = vrot.lane.b32.xlu1 %v1775_v21, %s2057_s22  ;;  %v655_v8 = vpop.f32.mrb[6].mxu0 }
 0x19a   : > { %v663_v23 = vld [vmem:[#allocation2] sm:$0xf]  ;;  %801 = vrot.lane.b32.xlu0 %v1776_v22, %s2058_s21  ;;  %v660_v10 = vpack.c.bf16 %v655_v8, %v652_v5  ;;  %v1600_v11 = vpop.f32.mrb[7].mxu0  ;;  %v871_v8 = vld [vmem:[#allocation4 + $0x8] sm:$0xff] }
 0x19b   : > { %1604 = vmatmul.mubr.msk.bf16.vlgmr.msra.gmra.mrb[4].mxu1 %vm664_vm3, %v663_v23  ;;  %v1777_v24 = vld [vmem:[#allocation2] ss:$0 sps:$4 sm:$0xff]  }
 0x19c   : > { %1615 = vmatprep.mubr.msk.bf16.mxu1 %vm2056_vm1, %v2055_v0  ;;  %1608 = vmatpush3.bf16.msra.mxu0 %v660_v10  ;;  %v1139_v22 = vld [vmem:[#allocation3 + $0x18] sm:$0xff] }
 0x19d   : > { %1087 = vrot.lane.b32.xlu1 %v1777_v24, %s2059_s24  ;;  %1619 = vmatprep.subr.bf16.mxu0 %v2055_v0 }
 0x19e   : > { %1089 = vrot.lane.b32.xlu0 %v659_v18, %s2059_s24  ;;  %v997_v18 = vld [vmem:[#allocation3 + $0x10] sm:$0xff] }
 0x205   : > { %v805_v28 = vpop.permute.xlu0 %804  ;;  %v948_v30 = vpop.permute.xlu1 %947 }
 0x206   : > { %v810_v29 = vsel %vm664_vm3, %v805_v28, 0  ;;  %v953_v32 = vsel %vm664_vm3, %v948_v30, 0 }
 0x207   : > { %1614 = vmatpush3.bf16.xpose.msra.mxu1 %v810_v29 }
 0x208   : > { %1625 = vmatprep.subr.bf16.mxu1 %v2055_v0 }
 0x20b   : > { %v946_v34 = vpop.permute.xlu1 %945 }
 0x20c   : > { %v802_v31 = vpop.permute.xlu0 %801 }
 0x20e   : > { %1616 = vmatmul.mubr.msk.bf16.vlgmr.msra.gmra.mrb[8].mxu1 %vm664_vm3, %v802_v31 }
 0x20f   : > { %1626 = vmatpush3.bf16.xpose.msra.mxu1 %v953_v32  ;;  %1627 = vmatprep.mubr.msk.bf16.mxu1 %vm2056_vm1, %v2055_v0  ;;  %v1088_v36 = vpop.permute.xlu1 %1087 }
 0x210   : > { %1637 = vmatprep.subr.bf16.mxu1 %v2055_v0  ;;  %v1090_v33 = vpop.permute.xlu0 %1089 }
 0x211   : > { %v1095_v35 = vsel %vm664_vm3, %v1090_v33, 0 }
 0x216   : > { %1628 = vmatmul.mubr.msk.bf16.vlgmr.msra.gmra.mrb[12].mxu1 %vm664_vm3, %v946_v34 }
 0x217   : > { %1638 = vmatpush3.bf16.xpose.msra.mxu1 %v1095_v35  ;;  %1639 = vmatprep.mubr.msk.bf16.mxu1 %vm2056_vm1, %v2055_v0 }
 0x218   : > { %1649 = vmatprep.subr.bf16.mxu1 %v2055_v0 }
 0x21e   : > { %1640 = vmatmul.mubr.msk.bf16.vlgmr.msra.gmra.mrb[16].mxu1 %vm664_vm3, %v1088_v36 }
 0x21f   : > { %1653 = vmatprep.mubr.msk.bf16.mxu1 %vm2056_vm1, %v2055_v0 }
 0x26e   : > { %v705_v43 = vpop.f32.mrb[4].mxu1 }
 0x26f   : > { %v2451_v44 = vsel %vm716_vm5, -3.4028235e+38, %v705_v43  ;;  %v1605_v45 = vpop.f32.mrb[5].mxu1 }
 0x270   : > { %v708_v46 = vpop.f32.mrb[6].mxu1  ;;  %v720_v47 = vsel %vm719_vm6, %v2451_v44, -inf }
 0x271   : > { %721 = vmax.xlane.f32.xlu0 %v720_v47  ;;  %v1606_v48 = vpop.f32.mrb[7].mxu1 }
 0x2e1   : > { %v846_v50 = vpop.f32.mrb[8].mxu1 }
 0x2e2   : > { %v2468_v51 = vsel %vm716_vm5, -3.4028235e+38, %v846_v50  ;;  %v1617_v52 = vpop.f32.mrb[9].mxu1 }
 0x2e3   : > { %v849_v53 = vpop.f32.mrb[10].mxu1  ;;  %v855_v54 = vsel %vm719_vm6, %v2468_v51, -inf }
 0x2e4   : > { %856 = vmax.xlane.f32.xlu1 %v855_v54  ;;  %v1618_v55 = vpop.f32.mrb[11].mxu1 }
 0x2e9   : > { %v989_v56 = vpop.f32.mrb[12].mxu1 }
 0x2ea   : > { %v2473_v57 = vsel %vm716_vm5, -3.4028235e+38, %v989_v56  ;;  %v1629_v58 = vpop.f32.mrb[13].mxu1 }
 0x2eb   : > { %v992_v59 = vpop.f32.mrb[14].mxu1  ;;  %v998_v60 = vsel %vm719_vm6, %v2473_v57, -inf }
 0x2ec   : > { %999 = vmax.xlane.f32.xlu0 %v998_v60  ;;  %v1630_v61 = vpop.f32.mrb[15].mxu1  ;;  %v735_v60 = vld [vmem:[#allocation4] sm:$0xff] }
 0x2f1   : > { %v1131_v62 = vpop.f32.mrb[16].mxu1 }
 0x2f2   : > { %v2478_v63 = vsel %vm716_vm5, -3.4028235e+38, %v1131_v62  ;;  %v1641_v1 = vpop.f32.mrb[17].mxu1 }
 0x2f3   : > { %v1134_v2 = vpop.f32.mrb[18].mxu1  ;;  %v1140_v3 = vsel %vm719_vm6, %v2478_v63, -inf }
 0x2f4   : > { %1141 = vmax.xlane.f32.xlu0 %v1140_v3  ;;  %v1642_v4 = vpop.f32.mrb[19].mxu1 }
 0x2fe   : > { %v722_v9 = vpop.xlane.xlu0 %721 }
 0x2ff   : > { %v723_v12 = vmax.f32 %v2482_v6, %v722_v9 }
 0x301   : > { %v724_v13 = vsub.f32 %v2482_v6, %v723_v12  ;;  %796 = vst.msk [vmem:[#allocation3] sm:$0xff] %vm528_vm7, %v723_v12  ;;  %729 = vperm.xlu1 %1769, %v723_v12   ;;  %v1014_v12 = vld [vmem:[#allocation4 + $0x10] sm:$0xff] }
 0x303   : > { %v725_v47 = vmul.f32 1.442695, %v724_v13  ;;  %v787_v13 = vld [vmem:[#allocation5] sm:$0xff] }
 0x371   : > { %v857_v15 = vpop.xlane.xlu1 %856 }
 0x372   : > { %v858_v16 = vmax.f32 %v854_v14, %v857_v15 }
 0x374   : > { %v859_v17 = vsub.f32 %v854_v14, %v858_v16  ;;  %940 = vst.msk [vmem:[#allocation3 + $0x8] sm:$0xff] %vm528_vm7, %v858_v16  ;;  %864 = vperm.xlu0 %1770, %v858_v16  }
 0x379   : > { %v1000_v19 = vpop.xlane.xlu0 %999 }
 0x37a   : > { %v1001_v20 = vmax.f32 %v997_v18, %v1000_v19 }
 0x37c   : > { %v1002_v21 = vsub.f32 %v997_v18, %v1001_v20  ;;  %1082 = vst.msk [vmem:[#allocation3 + $0x10] sm:$0xff] %vm528_vm7, %v1001_v20  ;;  %1007 = vperm.xlu1 %1769, %v1001_v20  }
 0x37e   : > { %v1003_v52 = vmul.f32 1.442695, %v1002_v21 }
 0x380   : > { %v730_v23 = vpop.permute.xlu1 %729  ;;  %880 = vrot.lane.b32.xlu1 %v660_v10, %s2058_s21 }
 0x381   : > { %v732_v24 = vsub.f32 %v2451_v44, %v730_v23  ;;  %v1142_v25 = vpop.xlane.xlu0 %1141  ;;  %v1156_v23 = vld [vmem:[#allocation4 + $0x18] sm:$0xff] }
 0x382   : > { %v1143_v26 = vmax.f32 %v1139_v22, %v1142_v25 }
 0x383   : > { %v733_v27 = vmul.f32 1.442695, %v732_v24 }
 0x384   : > { %v1144_v28 = vsub.f32 %v1139_v22, %v1143_v26  ;;  %1224 = vst.msk [vmem:[#allocation3 + $0x18] sm:$0xff] %vm528_vm7, %v1143_v26  ;;  %1149 = vperm.xlu1 %1769, %v1143_v26  }
 0x385   : > { %1782 = vpow2.f32 %v733_v27 }
 0x386   : > { %v1145_v54 = vmul.f32 1.442695, %v1144_v28 }
 0x388   : > { %1022 = vrot.lane.b32.xlu1 %v660_v10, %s2057_s22 }
 0x38c   : > { %1164 = vrot.lane.b32.xlu1 %v660_v10, %s2059_s24  ;;  %s2626_s24 = sld [smem:[#allocation26_spill]] }
 0x38f   : > { %v1783_v29 = vpop.eup %1782 }
 0x390   : > { %v743_v30 = vpack.c.bf16 %v1783_v29, %v1783_v29  ;;  %v737_v31 = vsel %vm719_vm6, %v1783_v29, 0.0 }
 0x392   : > { %1610 = vmatmul.mubr.msk.bf16.vlgmr.msra.gmra.mrb[8].mxu0 %vm719_vm6, %v743_v30  ;;  %s2537_s6 = scalar_lea.hbm %s2626_s24, %s1545_s11 }
 0x393   : > { %1621 = vmatprep.mubr.msk.bf16.mxu0 %vm2056_vm1, %v2055_v0 }
 0x3b0   : > { %738 = vadd.xlane.f32.xlu1 %v737_v31 }
 0x3f3   : > { %v865_v32 = vpop.permute.xlu0 %864 }
 0x3f4   : > { %v867_v33 = vsub.f32 %v2468_v51, %v865_v32  ;;  %v860_v51 = vmul.f32 1.442695, %v859_v17 }
 0x3f6   : > { %v868_v34 = vmul.f32 1.442695, %v867_v33 }
 0x3f8   : > { %1784 = vpow2.f32 %v868_v34 }
 0x3fb   : > { %v1008_v35 = vpop.permute.xlu1 %1007 }
 0x3fc   : > { %v1010_v36 = vsub.f32 %v2473_v57, %v1008_v35 }
 0x3fe   : > { %v1011_v37 = vmul.f32 1.442695, %v1010_v36 }
 0x3ff   : > { %v881_v38 = vpop.permute.xlu1 %880 }
 0x400   : > { %1786 = vpow2.f32 %v1011_v37  ;;  %1620 = vmatpush3.bf16.msra.mxu0 %v881_v38 }
 0x401   : > { %1631 = vmatprep.subr.bf16.mxu0 %v2055_v0 }
 0x402   : > { %v1785_v39 = vpop.eup %1784 }
 0x403   : > { %v1150_v40 = vpop.permute.xlu1 %1149  ;;  %v873_v41 = vsel %vm719_vm6, %v1785_v39, 0.0  ;;  %v878_v42 = vpack.c.bf16 %v1785_v39, %v1785_v39 }
 0x404   : > { %v1152_v43 = vsub.f32 %v2478_v63, %v1150_v40  ;;  %874 = vadd.xlane.f32.xlu0 %v873_v41 }
 0x405   : > { %1622 = vmatmul.mubr.msk.bf16.vlgmr.msra.gmra.mrb[12].mxu0 %vm719_vm6, %v878_v42 }
 0x406   : > { %v1153_v44 = vmul.f32 1.442695, %v1152_v43  ;;  %1633 = vmatprep.mubr.msk.bf16.mxu0 %vm2056_vm1, %v2055_v0  ;;  %v1780_v43 = vld [vmem:[#allocation14] sm:$0xff]  }
 0x407   : > { %v1023_v45 = vpop.permute.xlu1 %1022  ;;  %1650 = vmatpush3.bf16.msra.mxu1 %v1780_v43 }
 0x408   : > { %1788 = vpow2.f32 %v1153_v44  ;;  %1632 = vmatpush3.bf16.msra.mxu0 %v1023_v45  ;;  %v1781_v44 = vld [vmem:[#allocation14 + $0x8] sm:$0xff]   ;;  %1651 = vmatprep.subr.bf16.mxu1 %v2055_v0 }
 0x409   : > { %1643 = vmatprep.subr.bf16.mxu0 %v2055_v0  ;;  %1790 = vpow2.f32 %v725_v47 }
 0x40a   : > { %v1787_v46 = vpop.eup %1786  ;;  %1792 = vpow2.f32 %v860_v51 }
 0x40b   : > { %v1165_v48 = vpop.permute.xlu1 %1164  ;;  %v1016_v49 = vsel %vm719_vm6, %v1787_v46, 0.0  ;;  %v1021_v50 = vpack.c.bf16 %v1787_v46, %v1787_v46  ;;  %1794 = vpow2.f32 %v1003_v52  ;;  %1652 = vmatpush3.bf16.msra.mxu1 %v1781_v44 }
 0x40c   : > { %1017 = vadd.xlane.f32.xlu1 %v1016_v49  ;;  %1796 = vpow2.f32 %v1145_v54 }
 0x40d   : > { %1634 = vmatmul.mubr.msk.bf16.vlgmr.msra.gmra.mrb[16].mxu0 %vm719_vm6, %v1021_v50 }
 0x40e   : > { %1644 = vmatpush3.bf16.msra.mxu0 %v1165_v48  ;;  %1645 = vmatprep.mubr.msk.bf16.mxu0 %vm2056_vm1, %v2055_v0 }
 0x412   : > { %v1789_v53 = vpop.eup %1788 }
 0x413   : > { %v1163_v55 = vpack.c.bf16 %v1789_v53, %v1789_v53  ;;  %v1791_v56 = vpop.eup %1790  ;;  %v1158_v1 = vsel %vm719_vm6, %v1789_v53, 0.0 }
 0x414   : > { %v1793_v57 = vpop.eup %1792  ;;  %v736_v61 = vmul.f32 %v1791_v56, %v735_v60 }
 0x415   : > { %1646 = vmatmul.mubr.msk.bf16.vlgmr.msra.gmra.mrb[20].mxu0 %vm719_vm6, %v1163_v55  ;;  %v1795_v58 = vpop.eup %1794  ;;  %v872_v9 = vmul.f32 %v1793_v57, %v871_v8 }
 0x416   : > { %v1797_v59 = vpop.eup %1796  ;;  %v1015_v14 = vmul.f32 %v1795_v58, %v1014_v12 }
 0x417   : > { %v1157_v24 = vmul.f32 %v1797_v59, %v1156_v23 }
 0x41a   : > { %790 = vperm.xlu0 %1770, %v1791_v56  }
 0x41d   : > { %929 = vperm.xlu1 %1769, %v1793_v57  }
 0x41e   : > { %1071 = vperm.xlu0 %1770, %v1795_v58  }
 0x422   : > { %1213 = vperm.xlu0 %1770, %v1797_v59  }
 0x43d   : > { %v739_v62 = vpop.xlane.xlu1 %738 }
 0x43e   : > { %v740_v63 = vadd.f32 %v739_v62, %v736_v61 }
 0x440   : > { %742 = vst.msk [vmem:[#allocation4] sm:$0xff] %vm528_vm7, %v740_v63 }
 0x441   : > { %1159 = vadd.xlane.f32.xlu1 %v1158_v1 }
 0x447   : > { %v1228_v2 = vld [vmem:[#allocation4] sm:$0xff] }
 0x448   : > { %1798 = vrcp.f32 %v1228_v2 }
 0x452   : > { %v1799_v3 = vpop.eup %1798 }
 0x453   : > { %1233 = vperm.xlu0 %1770, %v1799_v3  }
 0x465   : > { %v781_v4 = vpop.f32.mrb[8].mxu0 }
 0x466   : > { %v1611_v5 = vpop.f32.mrb[9].mxu0 }
 0x467   : > { %v784_v6 = vpop.f32.mrb[10].mxu0 }
 0x468   : > { %v1612_v7 = vpop.f32.mrb[11].mxu0 }
 0x491   : > { %v875_v10 = vpop.xlane.xlu0 %874 }
 0x492   : > { %v876_v11 = vadd.f32 %v875_v10, %v872_v9  ;;  %v1540_v9 = vld [vmem:[%s2625_s13] ss:$0 sm:$0xff] }
 0x494   : > { %877 = vst.msk [vmem:[#allocation4 + $0x8] sm:$0xff] %vm528_vm7, %v876_v11 }
 0x499   : > { %v791_v15 = vpop.permute.xlu0 %790  ;;  %v1018_v16 = vpop.xlane.xlu1 %1017 }
 0x49a   : > { %v793_v17 = vmul.f32 %v791_v15, %v787_v13  ;;  %v1019_v18 = vadd.f32 %v1018_v16, %v1015_v14 }
 0x49b   : > { %v1238_v31 = vld [vmem:[#allocation4 + $0x8] sm:$0xff] }
 0x49c   : > { %v794_v19 = vadd.f32 %v793_v17, %v781_v4  ;;  %1020 = vst.msk [vmem:[#allocation4 + $0x10] sm:$0xff] %vm528_vm7, %v1019_v18 }
 0x49d   : > { %v930_v22 = vpop.permute.xlu1 %929  ;;  %v1072_v49 = vpop.permute.xlu0 %1071 }
 0x49e   : > { %795 = vst.msk [vmem:[#allocation5] sm:$0xff] %vm664_vm3, %v794_v19 }
 0x4a1   : > { %v1214_v54 = vpop.permute.xlu0 %1213 }
 0x4a3   : > { %v1248_v20 = vld [vmem:[#allocation4 + $0x10] sm:$0xff] }
 0x4a4   : > { %1800 = vrcp.f32 %v1248_v20 }
 0x4a5   : > { %1802 = vrcp.f32 %v1238_v31  ;;  %v926_v45 = vld [vmem:[#allocation5] sm:$0xff] }
 0x4a6   : > { %v932_v46 = vmul.f32 %v930_v22, %v926_v45 }
 0x4ae   : > { %v1801_v21 = vpop.eup %1800 }
 0x4af   : > { %1253 = vperm.xlu0 %1770, %v1801_v21   ;;  %v1803_v41 = vpop.eup %1802 }
 0x4ce   : > { %v1160_v25 = vpop.xlane.xlu1 %1159 }
 0x4cf   : > { %v1161_v26 = vadd.f32 %v1160_v25, %v1157_v24 }
 0x4d1   : > { %1162 = vst.msk [vmem:[#allocation4 + $0x18] sm:$0xff] %vm528_vm7, %v1161_v26 }
 0x4d2   : > { %v1234_v58 = vpop.permute.xlu0 %1233 }
 0x4d8   : > { %v920_v27 = vpop.f32.mrb[12].mxu0  ;;  %v1258_v36 = vld [vmem:[#allocation4 + $0x18] sm:$0xff] }
 0x4d9   : > { %934 = vrot.lane.b32.xlu1 %v920_v27, %s2062_s20  ;;  %v1623_v28 = vpop.f32.mrb[13].mxu0  ;;  %1804 = vrcp.f32 %v1258_v36 }
 0x4da   : > { %v923_v29 = vpop.f32.mrb[14].mxu0 }
 0x4db   : > { %v1624_v30 = vpop.f32.mrb[15].mxu0 }
 0x4e0   : > { %v1062_v32 = vpop.f32.mrb[16].mxu0 }
 0x4e1   : > { %1076 = vrot.lane.b32.xlu1 %v1062_v32, %s2063_s0  ;;  %v1635_v33 = vpop.f32.mrb[17].mxu0 }
 0x4e2   : > { %v1065_v34 = vpop.f32.mrb[18].mxu0 }
 0x4e3   : > { %v1636_v35 = vpop.f32.mrb[19].mxu0  ;;  %v1805_v42 = vpop.eup %1804 }
 0x4e8   : > { %v1204_v37 = vpop.f32.mrb[20].mxu0 }
 0x4e9   : > { %1218 = vrot.lane.b32.xlu1 %v1204_v37, %s2064_s15  ;;  %v1647_v38 = vpop.f32.mrb[21].mxu0 }
 0x4ea   : > { %v1207_v39 = vpop.f32.mrb[22].mxu0 }
 0x4eb   : > { %v1648_v40 = vpop.f32.mrb[23].mxu0 }
 0x4ed   : > { %1243 = vperm.xlu1 %1769, %v1803_v41  }
 0x4f1   : > { %1263 = vperm.xlu1 %1769, %v1805_v42  }
 0x52e   : > { %v1254_v1 = vpop.permute.xlu0 %1253 }
 0x54b   : > { %v935_v47 = vpop.permute.xlu1 %934 }
 0x54c   : > { %v937_v48 = vadd.f32 %v935_v47, %v932_v46 }
 0x54e   : > { %939 = vst.msk [vmem:[#allocation5] sm:$0xff] %vm938_vm8, %v937_v48 }
 0x553   : > { %v1077_v52 = vpop.permute.xlu1 %1076 }
 0x555   : > { %v1068_v50 = vld [vmem:[#allocation5] sm:$0xff] }
 0x556   : > { %v1074_v51 = vmul.f32 %v1072_v49, %v1068_v50 }
 0x558   : > { %v1079_v53 = vadd.f32 %v1077_v52, %v1074_v51 }
 0x55a   : > { %1081 = vst.msk [vmem:[#allocation5] sm:$0xff] %vm1080_vm9, %v1079_v53 }
 0x55b   : > { %v1219_v0 = vpop.permute.xlu1 %1218 }
 0x561   : > { %v1210_v55 = vld [vmem:[#allocation5] sm:$0xff] }
 0x562   : > { %v1216_v56 = vmul.f32 %v1214_v54, %v1210_v55 }
 0x564   : > { %v1221_v57 = vadd.f32 %v1219_v0, %v1216_v56 }
 0x566   : > { %1223 = vst.msk [vmem:[#allocation5] sm:$0xff] %vm1222_vm10, %v1221_v57 }
 0x56c   : > { %v1244_v62 = vpop.permute.xlu1 %1243 }
 0x56d   : > { %v1230_v59 = vld [vmem:[#allocation5] sm:$0xff] }
 0x56e   : > { %v1236_v60 = vmul.f32 %v1234_v58, %v1230_v59 }
 0x570   : > { %1237 = vst.msk [vmem:[#allocation5] sm:$0xff] %vm664_vm3, %v1236_v60  ;;  %v1264_v5 = vpop.permute.xlu1 %1263 }
 0x577   : > { %v1240_v61 = vld [vmem:[#allocation5] sm:$0xff] }
 0x578   : > { %v1246_v63 = vmul.f32 %v1244_v62, %v1240_v61 }
 0x57a   : > { %1247 = vst.msk [vmem:[#allocation5] sm:$0xff] %vm938_vm8, %v1246_v63 }
 0x581   : > { %v1250_v2 = vld [vmem:[#allocation5] sm:$0xff] }
 0x582   : > { %v1256_v3 = vmul.f32 %v1254_v1, %v1250_v2 }
 0x584   : > { %1257 = vst.msk [vmem:[#allocation5] sm:$0xff] %vm1080_vm9, %v1256_v3 }
 0x58b   : > { %v1260_v4 = vld [vmem:[#allocation5] sm:$0xff] }
 0x58c   : > { %v1266_v6 = vmul.f32 %v1264_v5, %v1260_v4 }
 0x58e   : > { %1267 = vst.msk [vmem:[#allocation5] sm:$0xff] %vm1222_vm10, %v1266_v6 }
 0x595   : > { %v1268_v7 = vld [vmem:[#allocation5] sm:$0xff] }
 0x596   : > { %v1269_v8 = vpack.c.bf16 %v1268_v7, %v1268_v7 }
 0x598   : > { %1654 = vmatmul.mubr.msk.bf16.vlgmr.msra.gmra.mrb[20].mxu1 %vm481_vm0, %v1269_v8 }
 0x66b   : > { %v1330_v10 = vpop.f32.mrb[20].mxu1 }
 0x66c   : > { %v1331_v11 = vadd.f32 %v1540_v9, %v1330_v10  ;;  %v1655_v12 = vpop.f32.mrb[21].mxu1 }
 0x66d   : > { %v1333_v13 = vpop.f32.mrb[22].mxu1 }
 0x66e   : > { %v1656_v14 = vpop.f32.mrb[23].mxu1  ;;  %1336 = vst.msk [vmem:[%s450_s12] sm:$0xff] %vm481_vm0, %v1331_v11 }
 0x66f   : > { %1963 = shalt.err (!%p1960_p12)
}
 0x670   : > { %s1964_s27 = scalar_lea.hbm %s2537_s6, 128  ;;  %s1968_s15 = scalar_lea.hbm %s2626_s24, 256 }
 0x671   : > { %p1965_p6 = scmp.ne.s32.totalorder %s2537_s6, %s1964_s27  ;;  %p1969_p0 = scmp.lt.u32.totalorder %s2537_s6, %s2626_s24 }
 0x672   : > { %p1970_p2 = scmp.lt.u32.totalorder %s1968_s15, %s1964_s27  ;;  %p1972_p8 = scmp.lt.u32.totalorder %s1964_s27, %s2537_s6 }
 0x673   : > { %p1966_p7 = pnand %p1965_p6, %p2267_p10 }
 0x674   : > { %p1971_p4 = por %p1970_p2, %p1969_p0 }
 0x675   : > { %p1967_p9 = pneg %p1966_p7 }
 0x676   : > { %p1973_p1 = por %p1972_p8, %p1971_p4 }
 0x678   : > { %p1974_p13 = pnand %p1973_p1, %p1967_p9 }
 0x67a   : > { %1977 = shalt.err (!%p1974_p13)
}
 0x67b   : > { %1673 = dma.vmem_to_hbm [thread:$0]  (%p2267_p10), %s2539_s16, 128, %s2537_s6, %s1338_s30  }
 0x67c PF: > { %s2627_s13 = sld [smem:[#allocation21_spill]]  ;;  %s2628_s11 = sld [smem:[#allocation22_spill]] }
 0x67d   : > { %p2630_p5 = scmp.ge.s32.totalorder %s2044_s10, 2 }
 0x682   : > { %s1364_s12 = sand.u32 1, %s2627_s13   ;;  %p2629_p3 = scmp.ne.s32.totalorder %s2628_s11, 0 }
 0x683   : > { %s1365_s22 = scalar_lea.sflag [#allocation8], %s1364_s12 }
 0x684   : > { %p1693_p11 = pnand %p2630_p5, %p2629_p3 }
 0x686   : > { %2019 = dma.done.wait (!%p1693_p11), %s1365_s22, 128  }
 0x687   : > { %2021 = vsyncadd (!%p1693_p11), %s1365_s22, 4294967168  ;;  %s28_s10 = sadd.s32 1, %s2044_s10   ;;  %s2631_s27 = smov %s2028_s28 }
 0x688   : > { %p25_p12 = scmp.ge.s32.totalorder %s28_s10, 4   ;;  %s2632_s28 = smov %s2032_s29 }
 0x689   : > { %s2633_s29 = smov %s2282_s14  ;;  %s2634_s30 = smov %s2040_s9 }
 0x68a   : > { %s2635_s9 = smov %s2637_s18  ;;  %27 = sbr.rel (!%p25_p12) target bundleno = 14 (0xe), region = 139 }
 0x691   :  { %1370 = vsyncpa [#allocation7], 1 }
 0x692   :  { %1372 = vsyncpa [#allocation7 + $0x1], 1 }
 0x693   :  { %1373 = vsyncpa [#allocation10], 1 }
 0x694   :  { %1375 = vsyncpa [#allocation10 + $0x1], 1 }
 0x695   :  { %1376 = vsyncpa [#allocation13], 1 }
 0x696   :  { %1377 = vsyncpa [#allocation8], 1 }
 0x697   :  { %1379 = vsyncpa [#allocation8 + $0x1], 1 }

</bundles_post_ra>
